<compile_context>
chip_gen: v7x
topology: tpu7x:2x2x1
jax: 0.10.0
libtpu: 0.0.40
codegen_flags: <defaults>
</compile_context>

<pallas_src>
import functools
import math

import jax
import jax.numpy as jnp
from jax import lax
from jax.experimental import pallas as pl
from jax.experimental.pallas import tpu as pltpu

_VMEM_LIMIT = 32 * 1024 * 1024  # fits v7x's 64 MiB physical VMEM; raises v5e's 16 MiB default


# -----------------------------------------------------------------------------
# Fused kernel body: all LSTM layers + head, one time tile per grid step
# -----------------------------------------------------------------------------
def _fused_lstm_kernel(*refs, n_layers, batch_pad, unroll):
    """Ref layout (positional):
        x_ref                                   (tile_t*batch_pad, E)    streamed tile
        [w_ih_g, w_hh_g, b_g] * n_layers        per-layer gate-major weights (resident)
        head_w_t, head_b                        (H, tagset), (1, tagset)
        out_ref                                 (batch_pad, tagset)      resident output
        gx0..gx3                                (tile_t*batch_pad, H) f32  reused per layer
        seq_buf                                 (tile_t*batch_pad, H)      inter-layer acts
        [h_sc, c_sc] * n_layers                 (batch_pad, H) f32         recurrent state
    PyTorch gate order: i, f, g, o.
    """
    x_ref = refs[0]
    idx = 1
    layer_w = []
    for _ in range(n_layers):
        layer_w.append(refs[idx:idx + 3])
        idx += 3
    hw_ref, hb_ref = refs[idx], refs[idx + 1]
    idx += 2
    out_ref = refs[idx]
    idx += 1
    gx = refs[idx:idx + 4]
    idx += 4
    seq_buf = refs[idx]
    idx += 1
    states = []
    for _ in range(n_layers):
        states.append(refs[idx:idx + 2])
        idx += 2

    # Zero all recurrent state on the first time tile only.
    @pl.when(pl.program_id(0) == 0)
    def _init():
        for h_sc, c_sc in states:
            h_sc[...] = jnp.zeros_like(h_sc)
            c_sc[...] = jnp.zeros_like(c_sc)

    rows = x_ref.shape[0]
    tile_t = rows // batch_pad

    for layer in range(n_layers):
        wih_ref, whh_ref, b_ref = layer_w[layer]
        h_sc, c_sc = states[layer]
        is_last = layer == n_layers - 1

        # Layer input: streamed embedding tile for layer 0, VMEM seq buffer otherwise
        # (fully consumed by phase 1 before phase 2 overwrites it in place).
        x_in = x_ref[...] if layer == 0 else seq_buf[...]

        # Phase 1: time-batched input projection for the whole tile (no sequential
        # dependence): one (tile_t*B, In) x (In, H) matmul per gate, bias folded in,
        # f32 accumulation. Off the serial critical path.
        for g in range(4):
            gx[g][...] = (
                jnp.dot(x_in, wih_ref[g], preferred_element_type=jnp.float32) + b_ref[g]
            )

        # Hoist loop-invariant recurrent weights out of the timestep loop.
        whh = [whh_ref[g] for g in range(4)]
        mxu_dtype = whh[0].dtype

        # Phase 2: serial recurrence -- only h @ W_hh + f32 elementwise cell per step.
        def step(t, carry, _gx=gx, _whh=whh, _h=h_sc, _c=c_sc, _last=is_last,
                 _dt=mxu_dtype):
            row = pl.multiple_of(t * batch_pad, batch_pad)
            h_prev = _h[...].astype(_dt)
            c_prev = _c[...]
            pre = [
                _gx[g][pl.ds(row, batch_pad), :]
                + jnp.dot(h_prev, _whh[g], preferred_element_type=jnp.float32)
                for g in range(4)
            ]
            i_g = jax.nn.sigmoid(pre[0])
            f_g = jax.nn.sigmoid(pre[1])
            g_g = jnp.tanh(pre[2])
            o_g = jax.nn.sigmoid(pre[3])
            c_new = f_g * c_prev + i_g * g_g
            h_new = o_g * jnp.tanh(c_new)
            _c[...] = c_new
            _h[...] = h_new
            if not _last:  # last layer only needs h at t = T-1 (stays in h_sc)
                seq_buf[pl.ds(row, batch_pad), :] = h_new.astype(seq_buf.dtype)
            return carry

        lax.fori_loop(0, tile_t, step, 0, unroll=unroll)

    # Fused classification head on the very last time tile.
    @pl.when(pl.program_id(0) == pl.num_programs(0) - 1)
    def _head():
        h_last = states[n_layers - 1][0][...].astype(hw_ref.dtype)
        logits = (jnp.dot(h_last, hw_ref[...], preferred_element_type=jnp.float32)
                  + hb_ref[...])
        out_ref[...] = jax.nn.sigmoid(logits)


# -----------------------------------------------------------------------------
# pallas_call wrapper
# -----------------------------------------------------------------------------
def _unroll_for(tile_t):
    # Full unroll for short tiles (LLO scheduling visibility); partial otherwise.
    return tile_t if tile_t <= 16 else math.gcd(tile_t, 16)


def sentiment_lstm_fused(x2d, layer_params, head_w_t, head_b, *, batch_pad, tile_t):
    TB, E = x2d.shape
    T = TB // batch_pad
    H = layer_params[0]["w_hh_g"].shape[-1]
    tagset = head_w_t.shape[-1]
    n_layers = len(layer_params)
    nt = T // tile_t
    rows = tile_t * batch_pad
    mxu_dtype = layer_params[0]["w_ih_g"].dtype

    in_specs = [pl.BlockSpec((rows, E), lambda t: (t, 0))]   # streamed, double-buffered
    args = [x2d]
    for lp in layer_params:
        in_dim = lp["w_ih_g"].shape[1]
        in_specs += [
            pl.BlockSpec((4, in_dim, H), lambda t: (0, 0, 0)),   # W_ih (resident)
            pl.BlockSpec((4, H, H), lambda t: (0, 0, 0)),        # W_hh (resident)
            pl.BlockSpec((4, 1, H), lambda t: (0, 0, 0)),        # combined bias (resident)
        ]
        args += [lp["w_ih_g"], lp["w_hh_g"], lp["b_g"]]
    in_specs += [
        pl.BlockSpec((H, tagset), lambda t: (0, 0)),             # head W^T (resident)
        pl.BlockSpec((1, tagset), lambda t: (0, 0)),             # head bias (resident)
    ]
    args += [head_w_t, head_b]

    scratch = [pltpu.VMEM((rows, H), jnp.float32) for _ in range(4)]   # gate buffers
    scratch += [pltpu.VMEM((rows, H), mxu_dtype)]                      # inter-layer acts
    for _ in range(n_layers):
        scratch += [pltpu.VMEM((batch_pad, H), jnp.float32),           # h state
                    pltpu.VMEM((batch_pad, H), jnp.float32)]           # c state

    kernel = functools.partial(_fused_lstm_kernel, n_layers=n_layers,
                               batch_pad=batch_pad, unroll=_unroll_for(tile_t))
    return pl.pallas_call(
        kernel,
        out_shape=jax.ShapeDtypeStruct((batch_pad, tagset), jnp.float32),
        grid=(nt,),
        in_specs=in_specs,
        out_specs=pl.BlockSpec((batch_pad, tagset), lambda t: (0, 0)),
        scratch_shapes=scratch,
        compiler_params=pltpu.CompilerParams(
            dimension_semantics=("arbitrary",),  # sequential recurrence over time tiles
            vmem_limit_bytes=_VMEM_LIMIT,
        ),
    )(*args)


# -----------------------------------------------------------------------------
# Forward pass
# -----------------------------------------------------------------------------
def _round_up(x, m):
    return (x + m - 1) // m * m


def _pick_tile_t(T, tile_t):
    tt = max(1, min(tile_t, T))
    while T % tt:
        tt -= 1
    return tt


@functools.partial(jax.jit, static_argnames=("n_layers", "tile_t"))
def sentiment_lstm_forward(sentence, kparams, *, n_layers, tile_t=8):
    """sentence: (B, T) int32 token ids. Returns sigmoid(head(h_T)).squeeze() like torch."""
    B, T = sentence.shape
    mxu_dtype = kparams["lstm"][0]["w_ih_g"].dtype
    tile = _pick_tile_t(T, tile_t)

    # Embedding gather + time-major layout + sublane batch padding (plain-JAX glue).
    embs = jnp.take(kparams["emb"], sentence, axis=0)       # (B, T, E) f32
    x = jnp.transpose(embs, (1, 0, 2))                       # (T, B, E)
    b_pad = _round_up(B, 8)                                  # full sublane occupancy
    if b_pad != B:
        x = jnp.pad(x, ((0, 0), (0, b_pad - B), (0, 0)))
    E = x.shape[-1]
    x2d = x.reshape(T * b_pad, E).astype(mxu_dtype)          # flat time-major rows

    out = sentiment_lstm_fused(x2d, kparams["lstm"], kparams["head_w_t"],
                               kparams["head_b"], batch_pad=b_pad, tile_t=tile)
    return jnp.squeeze(out[:B])  # matches torch `sig_out.squeeze()`


# -----------------------------------------------------------------------------
# Parameter init (PyTorch layout) and repacking to the kernel layout
# -----------------------------------------------------------------------------
def init_raw_params(key, vocab_size, embedding_dim, hidden_size, tagset_size, n_layers):
    keys = jax.random.split(key, 2 + 4 * n_layers)
    scale = 1.0 / math.sqrt(hidden_size)
    raw = {"emb": 0.1 * jax.random.normal(keys[0], (vocab_size, embedding_dim), jnp.float32)}
    lstm = []
    for layer in range(n_layers):
        in_dim = embedding_dim if layer == 0 else hidden_size
        k0, k1, k2, k3 = keys[2 + 4 * layer: 6 + 4 * layer]
        lstm.append({
            "w_ih": scale * jax.random.normal(k0, (4 * hidden_size, in_dim), jnp.float32),
            "w_hh": scale * jax.random.normal(k1, (4 * hidden_size, hidden_size), jnp.float32),
            "b_ih": scale * jax.random.normal(k2, (4 * hidden_size,), jnp.float32),
            "b_hh": scale * jax.random.normal(k3, (4 * hidden_size,), jnp.float32),
        })
    raw["lstm"] = lstm
    raw["head_w"] = scale * jax.random.normal(keys[1], (tagset_size, hidden_size), jnp.float32)
    raw["head_b"] = jnp.zeros((tagset_size,), jnp.float32)
    return raw


def prep_params(raw, mxu_dtype=jnp.float32):
    """Repack PyTorch-layout weights into the gate-major kernel layout."""
    kp = {"emb": raw["emb"].astype(jnp.float32)}
    layers = []
    for lp in raw["lstm"]:
        four_h, in_dim = lp["w_ih"].shape
        H = four_h // 4
        layers.append({
            # (4, In, H): per-gate, pre-transposed for x @ W
            "w_ih_g": jnp.transpose(lp["w_ih"].reshape(4, H, in_dim), (0, 2, 1)).astype(mxu_dtype),
            # (4, H, H): per-gate, pre-transposed for h @ W
            "w_hh_g": jnp.transpose(lp["w_hh"].reshape(4, H, H), (0, 2, 1)).astype(mxu_dtype),
            # combined bias, kept f32 (folded into the f32 accumulator in phase 1)
            "b_g": (lp["b_ih"] + lp["b_hh"]).reshape(4, 1, H).astype(jnp.float32),
        })
    kp["lstm"] = layers
    kp["head_w_t"] = raw["head_w"].T.astype(mxu_dtype)        # (H, tagset)
    kp["head_b"] = raw["head_b"].reshape(1, -1).astype(jnp.float32)
    return kp


# -----------------------------------------------------------------------------
# Pure-JAX reference (PyTorch semantics) for correctness checking
# -----------------------------------------------------------------------------
def reference_forward(sentence, raw, n_layers):
    embs = jnp.take(raw["emb"], sentence, axis=0)  # (B, T, E)
    B, T, _ = embs.shape
    x = embs.astype(jnp.float32)
    for layer in range(n_layers):
        lp = raw["lstm"][layer]
        H = lp["w_hh"].shape[1]
        w_ih_t = lp["w_ih"].T
        w_hh_t = lp["w_hh"].T
        b = (lp["b_ih"] + lp["b_hh"])[None, :]
        h = jnp.zeros((B, H), jnp.float32)
        c = jnp.zeros((B, H), jnp.float32)
        ys = []
        for t in range(T):
            gates = x[:, t, :] @ w_ih_t + h @ w_hh_t + b
            i_g = jax.nn.sigmoid(gates[:, 0 * H:1 * H])
            f_g = jax.nn.sigmoid(gates[:, 1 * H:2 * H])
            g_g = jnp.tanh(gates[:, 2 * H:3 * H])
            o_g = jax.nn.sigmoid(gates[:, 3 * H:4 * H])
            c = f_g * c + i_g * g_g
            h = o_g * jnp.tanh(c)
            ys.append(h)
        x = jnp.stack(ys, axis=1)  # (B, T, H)
    logits = x[:, -1, :] @ raw["head_w"].T + raw["head_b"][None, :]
    return jnp.squeeze(jax.nn.sigmoid(logits))


# -----------------------------------------------------------------------------
# Demo / self-check
# -----------------------------------------------------------------------------
if __name__ == "__main__":
    vocab_size = 100
    embedding_dim = 32
    hidden_size = 32
    tagset_size = 1
    n_layers = 2
    batch = 2
    seq_len = 8
    tile_t = 4  # 2 time tiles -> exercises cross-tile state carry + input pipelining

    key = jax.random.PRNGKey(0)
    pkey, dkey = jax.random.split(key)
    raw = init_raw_params(pkey, vocab_size, embedding_dim, hidden_size, tagset_size, n_layers)
    sentence = jax.random.randint(dkey, (batch, seq_len), 0, vocab_size, dtype=jnp.int32)

    ref = reference_forward(sentence, raw, n_layers)

    # f32 everywhere (v5e-safe configuration): tight check against the pure-JAX reference.
    out_f32 = sentiment_lstm_forward(sentence, prep_params(raw, jnp.float32),
                                     n_layers=n_layers, tile_t=tile_t)
    out_f32 = jax.block_until_ready(out_f32)
    assert out_f32.shape == ref.shape, (out_f32.shape, ref.shape)
    assert jnp.allclose(out_f32, ref, atol=1e-4, rtol=1e-4), (out_f32, ref)

    # bf16 MXU operands (v6e/v7x configuration): f32 accumulation + f32 cell math.
    out_bf16 = sentiment_lstm_forward(sentence, prep_params(raw, jnp.bfloat16),
                                      n_layers=n_layers, tile_t=tile_t)
    out_bf16 = jax.block_until_ready(out_bf16)
    assert out_bf16.shape == ref.shape, (out_bf16.shape, ref.shape)
    assert bool(jnp.all(jnp.isfinite(out_bf16)))
    assert jnp.allclose(out_bf16, ref, atol=5e-2), (out_bf16, ref)

    print("KERNEL_OK")
</pallas_src>

<mosaic_0001>
module attributes {stable_mosaic.version = 11 : i64} {
  func.func @_fused_lstm_kernel(%arg0: i32, %arg1: memref<32x32xf32, #tpu.memory_space<vmem>>, %arg2: memref<4x32x32xf32, #tpu.memory_space<vmem>>, %arg3: memref<4x32x32xf32, #tpu.memory_space<vmem>>, %arg4: memref<4x1x32xf32, #tpu.memory_space<vmem>>, %arg5: memref<4x32x32xf32, #tpu.memory_space<vmem>>, %arg6: memref<4x32x32xf32, #tpu.memory_space<vmem>>, %arg7: memref<4x1x32xf32, #tpu.memory_space<vmem>>, %arg8: memref<32x1xf32, #tpu.memory_space<vmem>>, %arg9: memref<1x1xf32, #tpu.memory_space<vmem>>, %arg10: memref<8x1xf32, #tpu.memory_space<vmem>>, %arg11: memref<32x32xf32, #tpu.memory_space<vmem>>, %arg12: memref<32x32xf32, #tpu.memory_space<vmem>>, %arg13: memref<32x32xf32, #tpu.memory_space<vmem>>, %arg14: memref<32x32xf32, #tpu.memory_space<vmem>>, %arg15: memref<32x32xf32, #tpu.memory_space<vmem>>, %arg16: memref<8x32xf32, #tpu.memory_space<vmem>>, %arg17: memref<8x32xf32, #tpu.memory_space<vmem>>, %arg18: memref<8x32xf32, #tpu.memory_space<vmem>>, %arg19: memref<8x32xf32, #tpu.memory_space<vmem>>) attributes {dimension_semantics = [#tpu.dimension_semantics<arbitrary>], iteration_bounds = array<i64: 2>, scalar_prefetch = 0 : i64, scratch_operands = 9 : i64, tpu.core_type = #tpu.core_type<tc>, window_params = [{transform_indices = @transform_0, window_bounds = array<i64: 32, 32>}, {pipeline_mode = #tpu.pipeline_mode<synchronous>, transform_indices = @transform_1, window_bounds = array<i64: 4, 32, 32>}, {pipeline_mode = #tpu.pipeline_mode<synchronous>, transform_indices = @transform_2, window_bounds = array<i64: 4, 32, 32>}, {pipeline_mode = #tpu.pipeline_mode<synchronous>, transform_indices = @transform_3, window_bounds = array<i64: 4, 1, 32>}, {pipeline_mode = #tpu.pipeline_mode<synchronous>, transform_indices = @transform_4, window_bounds = array<i64: 4, 32, 32>}, {pipeline_mode = #tpu.pipeline_mode<synchronous>, transform_indices = @transform_5, window_bounds = array<i64: 4, 32, 32>}, {pipeline_mode = #tpu.pipeline_mode<synchronous>, transform_indices = @transform_6, window_bounds = array<i64: 4, 1, 32>}, {pipeline_mode = #tpu.pipeline_mode<synchronous>, transform_indices = @transform_7, window_bounds = array<i64: 32, 1>}, {pipeline_mode = #tpu.pipeline_mode<synchronous>, transform_indices = @transform_8, window_bounds = array<i64: 1, 1>}, {pipeline_mode = #tpu.pipeline_mode<synchronous>, transform_indices = @transform_9, window_bounds = array<i64: 8, 1>}]} {
    %c0_i32 = arith.constant 0 : i32
    %0 = arith.cmpi eq, %arg0, %c0_i32 : i32
    %1 = arith.extui %0 : i1 to i32
    %c0_i32_0 = arith.constant 0 : i32
    %2 = arith.cmpi ne, %1, %c0_i32_0 : i32
    scf.if %2 {
      %cst_267 = arith.constant 0.000000e+00 : f32
      %440 = vector.broadcast %cst_267 : f32 to vector<8x32xf32>
      %c0_268 = arith.constant 0 : index
      %c0_269 = arith.constant 0 : index
      %441 = vector.load %arg16[%c0_268, %c0_269] : memref<8x32xf32, #tpu.memory_space<vmem>>, vector<8x32xf32>
      tpu.vector_store %arg16[%c0_268, %c0_269], %440 {strides = array<i32>} : memref<8x32xf32, #tpu.memory_space<vmem>>, vector<8x32xf32>,
      %cst_270 = arith.constant 0.000000e+00 : f32
      %442 = vector.broadcast %cst_270 : f32 to vector<8x32xf32>
      %c0_271 = arith.constant 0 : index
      %c0_272 = arith.constant 0 : index
      %443 = vector.load %arg17[%c0_271, %c0_272] : memref<8x32xf32, #tpu.memory_space<vmem>>, vector<8x32xf32>
      tpu.vector_store %arg17[%c0_271, %c0_272], %442 {strides = array<i32>} : memref<8x32xf32, #tpu.memory_space<vmem>>, vector<8x32xf32>,
      %cst_273 = arith.constant 0.000000e+00 : f32
      %444 = vector.broadcast %cst_273 : f32 to vector<8x32xf32>
      %c0_274 = arith.constant 0 : index
      %c0_275 = arith.constant 0 : index
      %445 = vector.load %arg18[%c0_274, %c0_275] : memref<8x32xf32, #tpu.memory_space<vmem>>, vector<8x32xf32>
      tpu.vector_store %arg18[%c0_274, %c0_275], %444 {strides = array<i32>} : memref<8x32xf32, #tpu.memory_space<vmem>>, vector<8x32xf32>,
      %cst_276 = arith.constant 0.000000e+00 : f32
      %446 = vector.broadcast %cst_276 : f32 to vector<8x32xf32>
      %c0_277 = arith.constant 0 : index
      %c0_278 = arith.constant 0 : index
      %447 = vector.load %arg19[%c0_277, %c0_278] : memref<8x32xf32, #tpu.memory_space<vmem>>, vector<8x32xf32>
      tpu.vector_store %arg19[%c0_277, %c0_278], %446 {strides = array<i32>} : memref<8x32xf32, #tpu.memory_space<vmem>>, vector<8x32xf32>,
    } else {
    }
    %c0 = arith.constant 0 : index
    %c0_1 = arith.constant 0 : index
    %3 = vector.load %arg1[%c0, %c0_1] : memref<32x32xf32, #tpu.memory_space<vmem>>, vector<32x32xf32>
    %c0_2 = arith.constant 0 : index
    %c0_3 = arith.constant 0 : index
    %c0_4 = arith.constant 0 : index
    %4 = vector.load %arg2[%c0_2, %c0_3, %c0_4] : memref<4x32x32xf32, #tpu.memory_space<vmem>>, vector<1x32x32xf32>
    %5 = vector.shape_cast %4 : vector<1x32x32xf32> to vector<32x32xf32>
    %cst = arith.constant dense<0.000000e+00> : vector<32x32xf32>
    %6 = tpu.matmul %3, %5, %cst {dimension_numbers = #tpu.dot_dimension_numbers<[1], [0], [0], [1], [0, 0, 1, 1], [], []>} : vector<32x32xf32>, vector<32x32xf32>, vector<32x32xf32> -> vector<32x32xf32>
    %c0_5 = arith.constant 0 : index
    %c0_6 = arith.constant 0 : index
    %c0_7 = arith.constant 0 : index
    %7 = vector.load %arg4[%c0_5, %c0_6, %c0_7] : memref<4x1x32xf32, #tpu.memory_space<vmem>>, vector<1x1x32xf32>
    %8 = vector.shape_cast %7 : vector<1x1x32xf32> to vector<1x32xf32>
    %9 = vector.broadcast %8 : vector<1x32xf32> to vector<32x32xf32>
    %10 = arith.addf %6, %9 : vector<32x32xf32>
    %c0_8 = arith.constant 0 : index
    %c0_9 = arith.constant 0 : index
    %11 = vector.load %arg11[%c0_8, %c0_9] : memref<32x32xf32, #tpu.memory_space<vmem>>, vector<32x32xf32>
    tpu.vector_store %arg11[%c0_8, %c0_9], %10 {strides = array<i32>} : memref<32x32xf32, #tpu.memory_space<vmem>>, vector<32x32xf32>,
    %c1 = arith.constant 1 : index
    %c0_10 = arith.constant 0 : index
    %c0_11 = arith.constant 0 : index
    %12 = vector.load %arg2[%c1, %c0_10, %c0_11] : memref<4x32x32xf32, #tpu.memory_space<vmem>>, vector<1x32x32xf32>
    %13 = vector.shape_cast %12 : vector<1x32x32xf32> to vector<32x32xf32>
    %cst_12 = arith.constant dense<0.000000e+00> : vector<32x32xf32>
    %14 = tpu.matmul %3, %13, %cst_12 {dimension_numbers = #tpu.dot_dimension_numbers<[1], [0], [0], [1], [0, 0, 1, 1], [], []>} : vector<32x32xf32>, vector<32x32xf32>, vector<32x32xf32> -> vector<32x32xf32>
    %c1_13 = arith.constant 1 : index
    %c0_14 = arith.constant 0 : index
    %c0_15 = arith.constant 0 : index
    %15 = vector.load %arg4[%c1_13, %c0_14, %c0_15] : memref<4x1x32xf32, #tpu.memory_space<vmem>>, vector<1x1x32xf32>
    %16 = vector.shape_cast %15 : vector<1x1x32xf32> to vector<1x32xf32>
    %17 = vector.broadcast %16 : vector<1x32xf32> to vector<32x32xf32>
    %18 = arith.addf %14, %17 : vector<32x32xf32>
    %c0_16 = arith.constant 0 : index
    %c0_17 = arith.constant 0 : index
    %19 = vector.load %arg12[%c0_16, %c0_17] : memref<32x32xf32, #tpu.memory_space<vmem>>, vector<32x32xf32>
    tpu.vector_store %arg12[%c0_16, %c0_17], %18 {strides = array<i32>} : memref<32x32xf32, #tpu.memory_space<vmem>>, vector<32x32xf32>,
    %c2 = arith.constant 2 : index
    %c0_18 = arith.constant 0 : index
    %c0_19 = arith.constant 0 : index
    %20 = vector.load %arg2[%c2, %c0_18, %c0_19] : memref<4x32x32xf32, #tpu.memory_space<vmem>>, vector<1x32x32xf32>
    %21 = vector.shape_cast %20 : vector<1x32x32xf32> to vector<32x32xf32>
    %cst_20 = arith.constant dense<0.000000e+00> : vector<32x32xf32>
    %22 = tpu.matmul %3, %21, %cst_20 {dimension_numbers = #tpu.dot_dimension_numbers<[1], [0], [0], [1], [0, 0, 1, 1], [], []>} : vector<32x32xf32>, vector<32x32xf32>, vector<32x32xf32> -> vector<32x32xf32>
    %c2_21 = arith.constant 2 : index
    %c0_22 = arith.constant 0 : index
    %c0_23 = arith.constant 0 : index
    %23 = vector.load %arg4[%c2_21, %c0_22, %c0_23] : memref<4x1x32xf32, #tpu.memory_space<vmem>>, vector<1x1x32xf32>
    %24 = vector.shape_cast %23 : vector<1x1x32xf32> to vector<1x32xf32>
    %25 = vector.broadcast %24 : vector<1x32xf32> to vector<32x32xf32>
    %26 = arith.addf %22, %25 : vector<32x32xf32>
    %c0_24 = arith.constant 0 : index
    %c0_25 = arith.constant 0 : index
    %27 = vector.load %arg13[%c0_24, %c0_25] : memref<32x32xf32, #tpu.memory_space<vmem>>, vector<32x32xf32>
    tpu.vector_store %arg13[%c0_24, %c0_25], %26 {strides = array<i32>} : memref<32x32xf32, #tpu.memory_space<vmem>>, vector<32x32xf32>,
    %c3 = arith.constant 3 : index
    %c0_26 = arith.constant 0 : index
    %c0_27 = arith.constant 0 : index
    %28 = vector.load %arg2[%c3, %c0_26, %c0_27] : memref<4x32x32xf32, #tpu.memory_space<vmem>>, vector<1x32x32xf32>
    %29 = vector.shape_cast %28 : vector<1x32x32xf32> to vector<32x32xf32>
    %cst_28 = arith.constant dense<0.000000e+00> : vector<32x32xf32>
    %30 = tpu.matmul %3, %29, %cst_28 {dimension_numbers = #tpu.dot_dimension_numbers<[1], [0], [0], [1], [0, 0, 1, 1], [], []>} : vector<32x32xf32>, vector<32x32xf32>, vector<32x32xf32> -> vector<32x32xf32>
    %c3_29 = arith.constant 3 : index
    %c0_30 = arith.constant 0 : index
    %c0_31 = arith.constant 0 : index
    %31 = vector.load %arg4[%c3_29, %c0_30, %c0_31] : memref<4x1x32xf32, #tpu.memory_space<vmem>>, vector<1x1x32xf32>
    %32 = vector.shape_cast %31 : vector<1x1x32xf32> to vector<1x32xf32>
    %33 = vector.broadcast %32 : vector<1x32xf32> to vector<32x32xf32>
    %34 = arith.addf %30, %33 : vector<32x32xf32>
    %c0_32 = arith.constant 0 : index
    %c0_33 = arith.constant 0 : index
    %35 = vector.load %arg14[%c0_32, %c0_33] : memref<32x32xf32, #tpu.memory_space<vmem>>, vector<32x32xf32>
    tpu.vector_store %arg14[%c0_32, %c0_33], %34 {strides = array<i32>} : memref<32x32xf32, #tpu.memory_space<vmem>>, vector<32x32xf32>,
    %c0_34 = arith.constant 0 : index
    %c0_35 = arith.constant 0 : index
    %c0_36 = arith.constant 0 : index
    %36 = vector.load %arg3[%c0_34, %c0_35, %c0_36] : memref<4x32x32xf32, #tpu.memory_space<vmem>>, vector<1x32x32xf32>
    %37 = vector.shape_cast %36 : vector<1x32x32xf32> to vector<32x32xf32>
    %c1_37 = arith.constant 1 : index
    %c0_38 = arith.constant 0 : index
    %c0_39 = arith.constant 0 : index
    %38 = vector.load %arg3[%c1_37, %c0_38, %c0_39] : memref<4x32x32xf32, #tpu.memory_space<vmem>>, vector<1x32x32xf32>
    %39 = vector.shape_cast %38 : vector<1x32x32xf32> to vector<32x32xf32>
    %c2_40 = arith.constant 2 : index
    %c0_41 = arith.constant 0 : index
    %c0_42 = arith.constant 0 : index
    %40 = vector.load %arg3[%c2_40, %c0_41, %c0_42] : memref<4x32x32xf32, #tpu.memory_space<vmem>>, vector<1x32x32xf32>
    %41 = vector.shape_cast %40 : vector<1x32x32xf32> to vector<32x32xf32>
    %c3_43 = arith.constant 3 : index
    %c0_44 = arith.constant 0 : index
    %c0_45 = arith.constant 0 : index
    %42 = vector.load %arg3[%c3_43, %c0_44, %c0_45] : memref<4x32x32xf32, #tpu.memory_space<vmem>>, vector<1x32x32xf32>
    %43 = vector.shape_cast %42 : vector<1x32x32xf32> to vector<32x32xf32>
    %c0_i32_46 = arith.constant 0 : i32
    %c8_i32 = arith.constant 8 : i32
    %44 = arith.muli %c0_i32_46, %c8_i32 : i32
    %45 = tpu.assume_multiple %44, 8 : i32
    %c0_47 = arith.constant 0 : index
    %c0_48 = arith.constant 0 : index
    %46 = vector.load %arg16[%c0_47, %c0_48] : memref<8x32xf32, #tpu.memory_space<vmem>>, vector<8x32xf32>
    %c0_49 = arith.constant 0 : index
    %c0_50 = arith.constant 0 : index
    %47 = vector.load %arg17[%c0_49, %c0_50] : memref<8x32xf32, #tpu.memory_space<vmem>>, vector<8x32xf32>
    %48 = arith.index_cast %45 : i32 to index
    %c0_51 = arith.constant 0 : index
    %49 = vector.load %arg11[%48, %c0_51] : memref<32x32xf32, #tpu.memory_space<vmem>>, vector<8x32xf32>
    %cst_52 = arith.constant dense<0.000000e+00> : vector<8x32xf32>
    %50 = tpu.matmul %46, %37, %cst_52 {dimension_numbers = #tpu.dot_dimension_numbers<[1], [0], [0], [1], [0, 0, 1, 1], [], []>} : vector<8x32xf32>, vector<32x32xf32>, vector<8x32xf32> -> vector<8x32xf32>
    %51 = arith.addf %49, %50 : vector<8x32xf32>
    %52 = arith.index_cast %45 : i32 to index
    %c0_53 = arith.constant 0 : index
    %53 = vector.load %arg12[%52, %c0_53] : memref<32x32xf32, #tpu.memory_space<vmem>>, vector<8x32xf32>
    %cst_54 = arith.constant dense<0.000000e+00> : vector<8x32xf32>
    %54 = tpu.matmul %46, %39, %cst_54 {dimension_numbers = #tpu.dot_dimension_numbers<[1], [0], [0], [1], [0, 0, 1, 1], [], []>} : vector<8x32xf32>, vector<32x32xf32>, vector<8x32xf32> -> vector<8x32xf32>
    %55 = arith.addf %53, %54 : vector<8x32xf32>
    %56 = arith.index_cast %45 : i32 to index
    %c0_55 = arith.constant 0 : index
    %57 = vector.load %arg13[%56, %c0_55] : memref<32x32xf32, #tpu.memory_space<vmem>>, vector<8x32xf32>
    %cst_56 = arith.constant dense<0.000000e+00> : vector<8x32xf32>
    %58 = tpu.matmul %46, %41, %cst_56 {dimension_numbers = #tpu.dot_dimension_numbers<[1], [0], [0], [1], [0, 0, 1, 1], [], []>} : vector<8x32xf32>, vector<32x32xf32>, vector<8x32xf32> -> vector<8x32xf32>
    %59 = arith.addf %57, %58 : vector<8x32xf32>
    %60 = arith.index_cast %45 : i32 to index
    %c0_57 = arith.constant 0 : index
    %61 = vector.load %arg14[%60, %c0_57] : memref<32x32xf32, #tpu.memory_space<vmem>>, vector<8x32xf32>
    %cst_58 = arith.constant dense<0.000000e+00> : vector<8x32xf32>
    %62 = tpu.matmul %46, %43, %cst_58 {dimension_numbers = #tpu.dot_dimension_numbers<[1], [0], [0], [1], [0, 0, 1, 1], [], []>} : vector<8x32xf32>, vector<32x32xf32>, vector<8x32xf32> -> vector<8x32xf32>
    %63 = arith.addf %61, %62 : vector<8x32xf32>
    %64 = arith.negf %51 : vector<8x32xf32>
    %65 = math.exp %64 : vector<8x32xf32>
    %cst_59 = arith.constant 1.000000e+00 : f32
    %66 = vector.broadcast %cst_59 : f32 to vector<8x32xf32>
    %67 = arith.addf %66, %65 : vector<8x32xf32>
    %68 = arith.divf %66, %67 : vector<8x32xf32>
    %69 = arith.negf %55 : vector<8x32xf32>
    %70 = math.exp %69 : vector<8x32xf32>
    %cst_60 = arith.constant 1.000000e+00 : f32
    %71 = vector.broadcast %cst_60 : f32 to vector<8x32xf32>
    %72 = arith.addf %71, %70 : vector<8x32xf32>
    %73 = arith.divf %71, %72 : vector<8x32xf32>
    %74 = math.tanh %59 : vector<8x32xf32>
    %75 = arith.negf %63 : vector<8x32xf32>
    %76 = math.exp %75 : vector<8x32xf32>
    %cst_61 = arith.constant 1.000000e+00 : f32
    %77 = vector.broadcast %cst_61 : f32 to vector<8x32xf32>
    %78 = arith.addf %77, %76 : vector<8x32xf32>
    %79 = arith.divf %77, %78 : vector<8x32xf32>
    %80 = arith.mulf %73, %47 : vector<8x32xf32>
    %81 = arith.mulf %68, %74 : vector<8x32xf32>
    %82 = arith.addf %80, %81 : vector<8x32xf32>
    %83 = math.tanh %82 : vector<8x32xf32>
    %84 = arith.mulf %79, %83 : vector<8x32xf32>
    %c0_62 = arith.constant 0 : index
    %c0_63 = arith.constant 0 : index
    %85 = vector.load %arg17[%c0_62, %c0_63] : memref<8x32xf32, #tpu.memory_space<vmem>>, vector<8x32xf32>
    tpu.vector_store %arg17[%c0_62, %c0_63], %82 {strides = array<i32>} : memref<8x32xf32, #tpu.memory_space<vmem>>, vector<8x32xf32>,
    %c0_64 = arith.constant 0 : index
    %c0_65 = arith.constant 0 : index
    %86 = vector.load %arg16[%c0_64, %c0_65] : memref<8x32xf32, #tpu.memory_space<vmem>>, vector<8x32xf32>
    tpu.vector_store %arg16[%c0_64, %c0_65], %84 {strides = array<i32>} : memref<8x32xf32, #tpu.memory_space<vmem>>, vector<8x32xf32>,
    %87 = arith.index_cast %45 : i32 to index
    %c0_66 = arith.constant 0 : index
    %88 = vector.load %arg15[%87, %c0_66] : memref<32x32xf32, #tpu.memory_space<vmem>>, vector<8x32xf32>
    tpu.vector_store %arg15[%87, %c0_66], %84 {strides = array<i32>} : memref<32x32xf32, #tpu.memory_space<vmem>>, vector<8x32xf32>,
    %c1_i32 = arith.constant 1 : i32
    %c8_i32_67 = arith.constant 8 : i32
    %89 = arith.muli %c1_i32, %c8_i32_67 : i32
    %90 = tpu.assume_multiple %89, 8 : i32
    %c0_68 = arith.constant 0 : index
    %c0_69 = arith.constant 0 : index
    %91 = vector.load %arg16[%c0_68, %c0_69] : memref<8x32xf32, #tpu.memory_space<vmem>>, vector<8x32xf32>
    %c0_70 = arith.constant 0 : index
    %c0_71 = arith.constant 0 : index
    %92 = vector.load %arg17[%c0_70, %c0_71] : memref<8x32xf32, #tpu.memory_space<vmem>>, vector<8x32xf32>
    %93 = arith.index_cast %90 : i32 to index
    %c0_72 = arith.constant 0 : index
    %94 = vector.load %arg11[%93, %c0_72] : memref<32x32xf32, #tpu.memory_space<vmem>>, vector<8x32xf32>
    %cst_73 = arith.constant dense<0.000000e+00> : vector<8x32xf32>
    %95 = tpu.matmul %91, %37, %cst_73 {dimension_numbers = #tpu.dot_dimension_numbers<[1], [0], [0], [1], [0, 0, 1, 1], [], []>} : vector<8x32xf32>, vector<32x32xf32>, vector<8x32xf32> -> vector<8x32xf32>
    %96 = arith.addf %94, %95 : vector<8x32xf32>
    %97 = arith.index_cast %90 : i32 to index
    %c0_74 = arith.constant 0 : index
    %98 = vector.load %arg12[%97, %c0_74] : memref<32x32xf32, #tpu.memory_space<vmem>>, vector<8x32xf32>
    %cst_75 = arith.constant dense<0.000000e+00> : vector<8x32xf32>
    %99 = tpu.matmul %91, %39, %cst_75 {dimension_numbers = #tpu.dot_dimension_numbers<[1], [0], [0], [1], [0, 0, 1, 1], [], []>} : vector<8x32xf32>, vector<32x32xf32>, vector<8x32xf32> -> vector<8x32xf32>
    %100 = arith.addf %98, %99 : vector<8x32xf32>
    %101 = arith.index_cast %90 : i32 to index
    %c0_76 = arith.constant 0 : index
    %102 = vector.load %arg13[%101, %c0_76] : memref<32x32xf32, #tpu.memory_space<vmem>>, vector<8x32xf32>
    %cst_77 = arith.constant dense<0.000000e+00> : vector<8x32xf32>
    %103 = tpu.matmul %91, %41, %cst_77 {dimension_numbers = #tpu.dot_dimension_numbers<[1], [0], [0], [1], [0, 0, 1, 1], [], []>} : vector<8x32xf32>, vector<32x32xf32>, vector<8x32xf32> -> vector<8x32xf32>
    %104 = arith.addf %102, %103 : vector<8x32xf32>
    %105 = arith.index_cast %90 : i32 to index
    %c0_78 = arith.constant 0 : index
    %106 = vector.load %arg14[%105, %c0_78] : memref<32x32xf32, #tpu.memory_space<vmem>>, vector<8x32xf32>
    %cst_79 = arith.constant dense<0.000000e+00> : vector<8x32xf32>
    %107 = tpu.matmul %91, %43, %cst_79 {dimension_numbers = #tpu.dot_dimension_numbers<[1], [0], [0], [1], [0, 0, 1, 1], [], []>} : vector<8x32xf32>, vector<32x32xf32>, vector<8x32xf32> -> vector<8x32xf32>
    %108 = arith.addf %106, %107 : vector<8x32xf32>
    %109 = arith.negf %96 : vector<8x32xf32>
    %110 = math.exp %109 : vector<8x32xf32>
    %cst_80 = arith.constant 1.000000e+00 : f32
    %111 = vector.broadcast %cst_80 : f32 to vector<8x32xf32>
    %112 = arith.addf %111, %110 : vector<8x32xf32>
    %113 = arith.divf %111, %112 : vector<8x32xf32>
    %114 = arith.negf %100 : vector<8x32xf32>
    %115 = math.exp %114 : vector<8x32xf32>
    %cst_81 = arith.constant 1.000000e+00 : f32
    %116 = vector.broadcast %cst_81 : f32 to vector<8x32xf32>
    %117 = arith.addf %116, %115 : vector<8x32xf32>
    %118 = arith.divf %116, %117 : vector<8x32xf32>
    %119 = math.tanh %104 : vector<8x32xf32>
    %120 = arith.negf %108 : vector<8x32xf32>
    %121 = math.exp %120 : vector<8x32xf32>
    %cst_82 = arith.constant 1.000000e+00 : f32
    %122 = vector.broadcast %cst_82 : f32 to vector<8x32xf32>
    %123 = arith.addf %122, %121 : vector<8x32xf32>
    %124 = arith.divf %122, %123 : vector<8x32xf32>
    %125 = arith.mulf %118, %92 : vector<8x32xf32>
    %126 = arith.mulf %113, %119 : vector<8x32xf32>
    %127 = arith.addf %125, %126 : vector<8x32xf32>
    %128 = math.tanh %127 : vector<8x32xf32>
    %129 = arith.mulf %124, %128 : vector<8x32xf32>
    %c0_83 = arith.constant 0 : index
    %c0_84 = arith.constant 0 : index
    %130 = vector.load %arg17[%c0_83, %c0_84] : memref<8x32xf32, #tpu.memory_space<vmem>>, vector<8x32xf32>
    tpu.vector_store %arg17[%c0_83, %c0_84], %127 {strides = array<i32>} : memref<8x32xf32, #tpu.memory_space<vmem>>, vector<8x32xf32>,
    %c0_85 = arith.constant 0 : index
    %c0_86 = arith.constant 0 : index
    %131 = vector.load %arg16[%c0_85, %c0_86] : memref<8x32xf32, #tpu.memory_space<vmem>>, vector<8x32xf32>
    tpu.vector_store %arg16[%c0_85, %c0_86], %129 {strides = array<i32>} : memref<8x32xf32, #tpu.memory_space<vmem>>, vector<8x32xf32>,
    %132 = arith.index_cast %90 : i32 to index
    %c0_87 = arith.constant 0 : index
    %133 = vector.load %arg15[%132, %c0_87] : memref<32x32xf32, #tpu.memory_space<vmem>>, vector<8x32xf32>
    tpu.vector_store %arg15[%132, %c0_87], %129 {strides = array<i32>} : memref<32x32xf32, #tpu.memory_space<vmem>>, vector<8x32xf32>,
    %c2_i32 = arith.constant 2 : i32
    %c8_i32_88 = arith.constant 8 : i32
    %134 = arith.muli %c2_i32, %c8_i32_88 : i32
    %135 = tpu.assume_multiple %134, 8 : i32
    %c0_89 = arith.constant 0 : index
    %c0_90 = arith.constant 0 : index
    %136 = vector.load %arg16[%c0_89, %c0_90] : memref<8x32xf32, #tpu.memory_space<vmem>>, vector<8x32xf32>
    %c0_91 = arith.constant 0 : index
    %c0_92 = arith.constant 0 : index
    %137 = vector.load %arg17[%c0_91, %c0_92] : memref<8x32xf32, #tpu.memory_space<vmem>>, vector<8x32xf32>
    %138 = arith.index_cast %135 : i32 to index
    %c0_93 = arith.constant 0 : index
    %139 = vector.load %arg11[%138, %c0_93] : memref<32x32xf32, #tpu.memory_space<vmem>>, vector<8x32xf32>
    %cst_94 = arith.constant dense<0.000000e+00> : vector<8x32xf32>
    %140 = tpu.matmul %136, %37, %cst_94 {dimension_numbers = #tpu.dot_dimension_numbers<[1], [0], [0], [1], [0, 0, 1, 1], [], []>} : vector<8x32xf32>, vector<32x32xf32>, vector<8x32xf32> -> vector<8x32xf32>
    %141 = arith.addf %139, %140 : vector<8x32xf32>
    %142 = arith.index_cast %135 : i32 to index
    %c0_95 = arith.constant 0 : index
    %143 = vector.load %arg12[%142, %c0_95] : memref<32x32xf32, #tpu.memory_space<vmem>>, vector<8x32xf32>
    %cst_96 = arith.constant dense<0.000000e+00> : vector<8x32xf32>
    %144 = tpu.matmul %136, %39, %cst_96 {dimension_numbers = #tpu.dot_dimension_numbers<[1], [0], [0], [1], [0, 0, 1, 1], [], []>} : vector<8x32xf32>, vector<32x32xf32>, vector<8x32xf32> -> vector<8x32xf32>
    %145 = arith.addf %143, %144 : vector<8x32xf32>
    %146 = arith.index_cast %135 : i32 to index
    %c0_97 = arith.constant 0 : index
    %147 = vector.load %arg13[%146, %c0_97] : memref<32x32xf32, #tpu.memory_space<vmem>>, vector<8x32xf32>
    %cst_98 = arith.constant dense<0.000000e+00> : vector<8x32xf32>
    %148 = tpu.matmul %136, %41, %cst_98 {dimension_numbers = #tpu.dot_dimension_numbers<[1], [0], [0], [1], [0, 0, 1, 1], [], []>} : vector<8x32xf32>, vector<32x32xf32>, vector<8x32xf32> -> vector<8x32xf32>
    %149 = arith.addf %147, %148 : vector<8x32xf32>
    %150 = arith.index_cast %135 : i32 to index
    %c0_99 = arith.constant 0 : index
    %151 = vector.load %arg14[%150, %c0_99] : memref<32x32xf32, #tpu.memory_space<vmem>>, vector<8x32xf32>
    %cst_100 = arith.constant dense<0.000000e+00> : vector<8x32xf32>
    %152 = tpu.matmul %136, %43, %cst_100 {dimension_numbers = #tpu.dot_dimension_numbers<[1], [0], [0], [1], [0, 0, 1, 1], [], []>} : vector<8x32xf32>, vector<32x32xf32>, vector<8x32xf32> -> vector<8x32xf32>
    %153 = arith.addf %151, %152 : vector<8x32xf32>
    %154 = arith.negf %141 : vector<8x32xf32>
    %155 = math.exp %154 : vector<8x32xf32>
    %cst_101 = arith.constant 1.000000e+00 : f32
    %156 = vector.broadcast %cst_101 : f32 to vector<8x32xf32>
    %157 = arith.addf %156, %155 : vector<8x32xf32>
    %158 = arith.divf %156, %157 : vector<8x32xf32>
    %159 = arith.negf %145 : vector<8x32xf32>
    %160 = math.exp %159 : vector<8x32xf32>
    %cst_102 = arith.constant 1.000000e+00 : f32
    %161 = vector.broadcast %cst_102 : f32 to vector<8x32xf32>
    %162 = arith.addf %161, %160 : vector<8x32xf32>
    %163 = arith.divf %161, %162 : vector<8x32xf32>
    %164 = math.tanh %149 : vector<8x32xf32>
    %165 = arith.negf %153 : vector<8x32xf32>
    %166 = math.exp %165 : vector<8x32xf32>
    %cst_103 = arith.constant 1.000000e+00 : f32
    %167 = vector.broadcast %cst_103 : f32 to vector<8x32xf32>
    %168 = arith.addf %167, %166 : vector<8x32xf32>
    %169 = arith.divf %167, %168 : vector<8x32xf32>
    %170 = arith.mulf %163, %137 : vector<8x32xf32>
    %171 = arith.mulf %158, %164 : vector<8x32xf32>
    %172 = arith.addf %170, %171 : vector<8x32xf32>
    %173 = math.tanh %172 : vector<8x32xf32>
    %174 = arith.mulf %169, %173 : vector<8x32xf32>
    %c0_104 = arith.constant 0 : index
    %c0_105 = arith.constant 0 : index
    %175 = vector.load %arg17[%c0_104, %c0_105] : memref<8x32xf32, #tpu.memory_space<vmem>>, vector<8x32xf32>
    tpu.vector_store %arg17[%c0_104, %c0_105], %172 {strides = array<i32>} : memref<8x32xf32, #tpu.memory_space<vmem>>, vector<8x32xf32>,
    %c0_106 = arith.constant 0 : index
    %c0_107 = arith.constant 0 : index
    %176 = vector.load %arg16[%c0_106, %c0_107] : memref<8x32xf32, #tpu.memory_space<vmem>>, vector<8x32xf32>
    tpu.vector_store %arg16[%c0_106, %c0_107], %174 {strides = array<i32>} : memref<8x32xf32, #tpu.memory_space<vmem>>, vector<8x32xf32>,
    %177 = arith.index_cast %135 : i32 to index
    %c0_108 = arith.constant 0 : index
    %178 = vector.load %arg15[%177, %c0_108] : memref<32x32xf32, #tpu.memory_space<vmem>>, vector<8x32xf32>
    tpu.vector_store %arg15[%177, %c0_108], %174 {strides = array<i32>} : memref<32x32xf32, #tpu.memory_space<vmem>>, vector<8x32xf32>,
    %c3_i32 = arith.constant 3 : i32
    %c8_i32_109 = arith.constant 8 : i32
    %179 = arith.muli %c3_i32, %c8_i32_109 : i32
    %180 = tpu.assume_multiple %179, 8 : i32
    %c0_110 = arith.constant 0 : index
    %c0_111 = arith.constant 0 : index
    %181 = vector.load %arg16[%c0_110, %c0_111] : memref<8x32xf32, #tpu.memory_space<vmem>>, vector<8x32xf32>
    %c0_112 = arith.constant 0 : index
    %c0_113 = arith.constant 0 : index
    %182 = vector.load %arg17[%c0_112, %c0_113] : memref<8x32xf32, #tpu.memory_space<vmem>>, vector<8x32xf32>
    %183 = arith.index_cast %180 : i32 to index
    %c0_114 = arith.constant 0 : index
    %184 = vector.load %arg11[%183, %c0_114] : memref<32x32xf32, #tpu.memory_space<vmem>>, vector<8x32xf32>
    %cst_115 = arith.constant dense<0.000000e+00> : vector<8x32xf32>
    %185 = tpu.matmul %181, %37, %cst_115 {dimension_numbers = #tpu.dot_dimension_numbers<[1], [0], [0], [1], [0, 0, 1, 1], [], []>} : vector<8x32xf32>, vector<32x32xf32>, vector<8x32xf32> -> vector<8x32xf32>
    %186 = arith.addf %184, %185 : vector<8x32xf32>
    %187 = arith.index_cast %180 : i32 to index
    %c0_116 = arith.constant 0 : index
    %188 = vector.load %arg12[%187, %c0_116] : memref<32x32xf32, #tpu.memory_space<vmem>>, vector<8x32xf32>
    %cst_117 = arith.constant dense<0.000000e+00> : vector<8x32xf32>
    %189 = tpu.matmul %181, %39, %cst_117 {dimension_numbers = #tpu.dot_dimension_numbers<[1], [0], [0], [1], [0, 0, 1, 1], [], []>} : vector<8x32xf32>, vector<32x32xf32>, vector<8x32xf32> -> vector<8x32xf32>
    %190 = arith.addf %188, %189 : vector<8x32xf32>
    %191 = arith.index_cast %180 : i32 to index
    %c0_118 = arith.constant 0 : index
    %192 = vector.load %arg13[%191, %c0_118] : memref<32x32xf32, #tpu.memory_space<vmem>>, vector<8x32xf32>
    %cst_119 = arith.constant dense<0.000000e+00> : vector<8x32xf32>
    %193 = tpu.matmul %181, %41, %cst_119 {dimension_numbers = #tpu.dot_dimension_numbers<[1], [0], [0], [1], [0, 0, 1, 1], [], []>} : vector<8x32xf32>, vector<32x32xf32>, vector<8x32xf32> -> vector<8x32xf32>
    %194 = arith.addf %192, %193 : vector<8x32xf32>
    %195 = arith.index_cast %180 : i32 to index
    %c0_120 = arith.constant 0 : index
    %196 = vector.load %arg14[%195, %c0_120] : memref<32x32xf32, #tpu.memory_space<vmem>>, vector<8x32xf32>
    %cst_121 = arith.constant dense<0.000000e+00> : vector<8x32xf32>
    %197 = tpu.matmul %181, %43, %cst_121 {dimension_numbers = #tpu.dot_dimension_numbers<[1], [0], [0], [1], [0, 0, 1, 1], [], []>} : vector<8x32xf32>, vector<32x32xf32>, vector<8x32xf32> -> vector<8x32xf32>
    %198 = arith.addf %196, %197 : vector<8x32xf32>
    %199 = arith.negf %186 : vector<8x32xf32>
    %200 = math.exp %199 : vector<8x32xf32>
    %cst_122 = arith.constant 1.000000e+00 : f32
    %201 = vector.broadcast %cst_122 : f32 to vector<8x32xf32>
    %202 = arith.addf %201, %200 : vector<8x32xf32>
    %203 = arith.divf %201, %202 : vector<8x32xf32>
    %204 = arith.negf %190 : vector<8x32xf32>
    %205 = math.exp %204 : vector<8x32xf32>
    %cst_123 = arith.constant 1.000000e+00 : f32
    %206 = vector.broadcast %cst_123 : f32 to vector<8x32xf32>
    %207 = arith.addf %206, %205 : vector<8x32xf32>
    %208 = arith.divf %206, %207 : vector<8x32xf32>
    %209 = math.tanh %194 : vector<8x32xf32>
    %210 = arith.negf %198 : vector<8x32xf32>
    %211 = math.exp %210 : vector<8x32xf32>
    %cst_124 = arith.constant 1.000000e+00 : f32
    %212 = vector.broadcast %cst_124 : f32 to vector<8x32xf32>
    %213 = arith.addf %212, %211 : vector<8x32xf32>
    %214 = arith.divf %212, %213 : vector<8x32xf32>
    %215 = arith.mulf %208, %182 : vector<8x32xf32>
    %216 = arith.mulf %203, %209 : vector<8x32xf32>
    %217 = arith.addf %215, %216 : vector<8x32xf32>
    %218 = math.tanh %217 : vector<8x32xf32>
    %219 = arith.mulf %214, %218 : vector<8x32xf32>
    %c0_125 = arith.constant 0 : index
    %c0_126 = arith.constant 0 : index
    %220 = vector.load %arg17[%c0_125, %c0_126] : memref<8x32xf32, #tpu.memory_space<vmem>>, vector<8x32xf32>
    tpu.vector_store %arg17[%c0_125, %c0_126], %217 {strides = array<i32>} : memref<8x32xf32, #tpu.memory_space<vmem>>, vector<8x32xf32>,
    %c0_127 = arith.constant 0 : index
    %c0_128 = arith.constant 0 : index
    %221 = vector.load %arg16[%c0_127, %c0_128] : memref<8x32xf32, #tpu.memory_space<vmem>>, vector<8x32xf32>
    tpu.vector_store %arg16[%c0_127, %c0_128], %219 {strides = array<i32>} : memref<8x32xf32, #tpu.memory_space<vmem>>, vector<8x32xf32>,
    %222 = arith.index_cast %180 : i32 to index
    %c0_129 = arith.constant 0 : index
    %223 = vector.load %arg15[%222, %c0_129] : memref<32x32xf32, #tpu.memory_space<vmem>>, vector<8x32xf32>
    tpu.vector_store %arg15[%222, %c0_129], %219 {strides = array<i32>} : memref<32x32xf32, #tpu.memory_space<vmem>>, vector<8x32xf32>,
    %c4_i32 = arith.constant 4 : i32
    %c0_130 = arith.constant 0 : index
    %c0_131 = arith.constant 0 : index
    %224 = vector.load %arg15[%c0_130, %c0_131] : memref<32x32xf32, #tpu.memory_space<vmem>>, vector<32x32xf32>
    %c0_132 = arith.constant 0 : index
    %c0_133 = arith.constant 0 : index
    %c0_134 = arith.constant 0 : index
    %225 = vector.load %arg5[%c0_132, %c0_133, %c0_134] : memref<4x32x32xf32, #tpu.memory_space<vmem>>, vector<1x32x32xf32>
    %226 = vector.shape_cast %225 : vector<1x32x32xf32> to vector<32x32xf32>
    %cst_135 = arith.constant dense<0.000000e+00> : vector<32x32xf32>
    %227 = tpu.matmul %224, %226, %cst_135 {dimension_numbers = #tpu.dot_dimension_numbers<[1], [0], [0], [1], [0, 0, 1, 1], [], []>} : vector<32x32xf32>, vector<32x32xf32>, vector<32x32xf32> -> vector<32x32xf32>
    %c0_136 = arith.constant 0 : index
    %c0_137 = arith.constant 0 : index
    %c0_138 = arith.constant 0 : index
    %228 = vector.load %arg7[%c0_136, %c0_137, %c0_138] : memref<4x1x32xf32, #tpu.memory_space<vmem>>, vector<1x1x32xf32>
    %229 = vector.shape_cast %228 : vector<1x1x32xf32> to vector<1x32xf32>
    %230 = vector.broadcast %229 : vector<1x32xf32> to vector<32x32xf32>
    %231 = arith.addf %227, %230 : vector<32x32xf32>
    %c0_139 = arith.constant 0 : index
    %c0_140 = arith.constant 0 : index
    %232 = vector.load %arg11[%c0_139, %c0_140] : memref<32x32xf32, #tpu.memory_space<vmem>>, vector<32x32xf32>
    tpu.vector_store %arg11[%c0_139, %c0_140], %231 {strides = array<i32>} : memref<32x32xf32, #tpu.memory_space<vmem>>, vector<32x32xf32>,
    %c1_141 = arith.constant 1 : index
    %c0_142 = arith.constant 0 : index
    %c0_143 = arith.constant 0 : index
    %233 = vector.load %arg5[%c1_141, %c0_142, %c0_143] : memref<4x32x32xf32, #tpu.memory_space<vmem>>, vector<1x32x32xf32>
    %234 = vector.shape_cast %233 : vector<1x32x32xf32> to vector<32x32xf32>
    %cst_144 = arith.constant dense<0.000000e+00> : vector<32x32xf32>
    %235 = tpu.matmul %224, %234, %cst_144 {dimension_numbers = #tpu.dot_dimension_numbers<[1], [0], [0], [1], [0, 0, 1, 1], [], []>} : vector<32x32xf32>, vector<32x32xf32>, vector<32x32xf32> -> vector<32x32xf32>
    %c1_145 = arith.constant 1 : index
    %c0_146 = arith.constant 0 : index
    %c0_147 = arith.constant 0 : index
    %236 = vector.load %arg7[%c1_145, %c0_146, %c0_147] : memref<4x1x32xf32, #tpu.memory_space<vmem>>, vector<1x1x32xf32>
    %237 = vector.shape_cast %236 : vector<1x1x32xf32> to vector<1x32xf32>
    %238 = vector.broadcast %237 : vector<1x32xf32> to vector<32x32xf32>
    %239 = arith.addf %235, %238 : vector<32x32xf32>
    %c0_148 = arith.constant 0 : index
    %c0_149 = arith.constant 0 : index
    %240 = vector.load %arg12[%c0_148, %c0_149] : memref<32x32xf32, #tpu.memory_space<vmem>>, vector<32x32xf32>
    tpu.vector_store %arg12[%c0_148, %c0_149], %239 {strides = array<i32>} : memref<32x32xf32, #tpu.memory_space<vmem>>, vector<32x32xf32>,
    %c2_150 = arith.constant 2 : index
    %c0_151 = arith.constant 0 : index
    %c0_152 = arith.constant 0 : index
    %241 = vector.load %arg5[%c2_150, %c0_151, %c0_152] : memref<4x32x32xf32, #tpu.memory_space<vmem>>, vector<1x32x32xf32>
    %242 = vector.shape_cast %241 : vector<1x32x32xf32> to vector<32x32xf32>
    %cst_153 = arith.constant dense<0.000000e+00> : vector<32x32xf32>
    %243 = tpu.matmul %224, %242, %cst_153 {dimension_numbers = #tpu.dot_dimension_numbers<[1], [0], [0], [1], [0, 0, 1, 1], [], []>} : vector<32x32xf32>, vector<32x32xf32>, vector<32x32xf32> -> vector<32x32xf32>
    %c2_154 = arith.constant 2 : index
    %c0_155 = arith.constant 0 : index
    %c0_156 = arith.constant 0 : index
    %244 = vector.load %arg7[%c2_154, %c0_155, %c0_156] : memref<4x1x32xf32, #tpu.memory_space<vmem>>, vector<1x1x32xf32>
    %245 = vector.shape_cast %244 : vector<1x1x32xf32> to vector<1x32xf32>
    %246 = vector.broadcast %245 : vector<1x32xf32> to vector<32x32xf32>
    %247 = arith.addf %243, %246 : vector<32x32xf32>
    %c0_157 = arith.constant 0 : index
    %c0_158 = arith.constant 0 : index
    %248 = vector.load %arg13[%c0_157, %c0_158] : memref<32x32xf32, #tpu.memory_space<vmem>>, vector<32x32xf32>
    tpu.vector_store %arg13[%c0_157, %c0_158], %247 {strides = array<i32>} : memref<32x32xf32, #tpu.memory_space<vmem>>, vector<32x32xf32>,
    %c3_159 = arith.constant 3 : index
    %c0_160 = arith.constant 0 : index
    %c0_161 = arith.constant 0 : index
    %249 = vector.load %arg5[%c3_159, %c0_160, %c0_161] : memref<4x32x32xf32, #tpu.memory_space<vmem>>, vector<1x32x32xf32>
    %250 = vector.shape_cast %249 : vector<1x32x32xf32> to vector<32x32xf32>
    %cst_162 = arith.constant dense<0.000000e+00> : vector<32x32xf32>
    %251 = tpu.matmul %224, %250, %cst_162 {dimension_numbers = #tpu.dot_dimension_numbers<[1], [0], [0], [1], [0, 0, 1, 1], [], []>} : vector<32x32xf32>, vector<32x32xf32>, vector<32x32xf32> -> vector<32x32xf32>
    %c3_163 = arith.constant 3 : index
    %c0_164 = arith.constant 0 : index
    %c0_165 = arith.constant 0 : index
    %252 = vector.load %arg7[%c3_163, %c0_164, %c0_165] : memref<4x1x32xf32, #tpu.memory_space<vmem>>, vector<1x1x32xf32>
    %253 = vector.shape_cast %252 : vector<1x1x32xf32> to vector<1x32xf32>
    %254 = vector.broadcast %253 : vector<1x32xf32> to vector<32x32xf32>
    %255 = arith.addf %251, %254 : vector<32x32xf32>
    %c0_166 = arith.constant 0 : index
    %c0_167 = arith.constant 0 : index
    %256 = vector.load %arg14[%c0_166, %c0_167] : memref<32x32xf32, #tpu.memory_space<vmem>>, vector<32x32xf32>
    tpu.vector_store %arg14[%c0_166, %c0_167], %255 {strides = array<i32>} : memref<32x32xf32, #tpu.memory_space<vmem>>, vector<32x32xf32>,
    %c0_168 = arith.constant 0 : index
    %c0_169 = arith.constant 0 : index
    %c0_170 = arith.constant 0 : index
    %257 = vector.load %arg6[%c0_168, %c0_169, %c0_170] : memref<4x32x32xf32, #tpu.memory_space<vmem>>, vector<1x32x32xf32>
    %258 = vector.shape_cast %257 : vector<1x32x32xf32> to vector<32x32xf32>
    %c1_171 = arith.constant 1 : index
    %c0_172 = arith.constant 0 : index
    %c0_173 = arith.constant 0 : index
    %259 = vector.load %arg6[%c1_171, %c0_172, %c0_173] : memref<4x32x32xf32, #tpu.memory_space<vmem>>, vector<1x32x32xf32>
    %260 = vector.shape_cast %259 : vector<1x32x32xf32> to vector<32x32xf32>
    %c2_174 = arith.constant 2 : index
    %c0_175 = arith.constant 0 : index
    %c0_176 = arith.constant 0 : index
    %261 = vector.load %arg6[%c2_174, %c0_175, %c0_176] : memref<4x32x32xf32, #tpu.memory_space<vmem>>, vector<1x32x32xf32>
    %262 = vector.shape_cast %261 : vector<1x32x32xf32> to vector<32x32xf32>
    %c3_177 = arith.constant 3 : index
    %c0_178 = arith.constant 0 : index
    %c0_179 = arith.constant 0 : index
    %263 = vector.load %arg6[%c3_177, %c0_178, %c0_179] : memref<4x32x32xf32, #tpu.memory_space<vmem>>, vector<1x32x32xf32>
    %264 = vector.shape_cast %263 : vector<1x32x32xf32> to vector<32x32xf32>
    %c0_i32_180 = arith.constant 0 : i32
    %c8_i32_181 = arith.constant 8 : i32
    %265 = arith.muli %c0_i32_180, %c8_i32_181 : i32
    %266 = tpu.assume_multiple %265, 8 : i32
    %c0_182 = arith.constant 0 : index
    %c0_183 = arith.constant 0 : index
    %267 = vector.load %arg18[%c0_182, %c0_183] : memref<8x32xf32, #tpu.memory_space<vmem>>, vector<8x32xf32>
    %c0_184 = arith.constant 0 : index
    %c0_185 = arith.constant 0 : index
    %268 = vector.load %arg19[%c0_184, %c0_185] : memref<8x32xf32, #tpu.memory_space<vmem>>, vector<8x32xf32>
    %269 = arith.index_cast %266 : i32 to index
    %c0_186 = arith.constant 0 : index
    %270 = vector.load %arg11[%269, %c0_186] : memref<32x32xf32, #tpu.memory_space<vmem>>, vector<8x32xf32>
    %cst_187 = arith.constant dense<0.000000e+00> : vector<8x32xf32>
    %271 = tpu.matmul %267, %258, %cst_187 {dimension_numbers = #tpu.dot_dimension_numbers<[1], [0], [0], [1], [0, 0, 1, 1], [], []>} : vector<8x32xf32>, vector<32x32xf32>, vector<8x32xf32> -> vector<8x32xf32>
    %272 = arith.addf %270, %271 : vector<8x32xf32>
    %273 = arith.index_cast %266 : i32 to index
    %c0_188 = arith.constant 0 : index
    %274 = vector.load %arg12[%273, %c0_188] : memref<32x32xf32, #tpu.memory_space<vmem>>, vector<8x32xf32>
    %cst_189 = arith.constant dense<0.000000e+00> : vector<8x32xf32>
    %275 = tpu.matmul %267, %260, %cst_189 {dimension_numbers = #tpu.dot_dimension_numbers<[1], [0], [0], [1], [0, 0, 1, 1], [], []>} : vector<8x32xf32>, vector<32x32xf32>, vector<8x32xf32> -> vector<8x32xf32>
    %276 = arith.addf %274, %275 : vector<8x32xf32>
    %277 = arith.index_cast %266 : i32 to index
    %c0_190 = arith.constant 0 : index
    %278 = vector.load %arg13[%277, %c0_190] : memref<32x32xf32, #tpu.memory_space<vmem>>, vector<8x32xf32>
    %cst_191 = arith.constant dense<0.000000e+00> : vector<8x32xf32>
    %279 = tpu.matmul %267, %262, %cst_191 {dimension_numbers = #tpu.dot_dimension_numbers<[1], [0], [0], [1], [0, 0, 1, 1], [], []>} : vector<8x32xf32>, vector<32x32xf32>, vector<8x32xf32> -> vector<8x32xf32>
    %280 = arith.addf %278, %279 : vector<8x32xf32>
    %281 = arith.index_cast %266 : i32 to index
    %c0_192 = arith.constant 0 : index
    %282 = vector.load %arg14[%281, %c0_192] : memref<32x32xf32, #tpu.memory_space<vmem>>, vector<8x32xf32>
    %cst_193 = arith.constant dense<0.000000e+00> : vector<8x32xf32>
    %283 = tpu.matmul %267, %264, %cst_193 {dimension_numbers = #tpu.dot_dimension_numbers<[1], [0], [0], [1], [0, 0, 1, 1], [], []>} : vector<8x32xf32>, vector<32x32xf32>, vector<8x32xf32> -> vector<8x32xf32>
    %284 = arith.addf %282, %283 : vector<8x32xf32>
    %285 = arith.negf %272 : vector<8x32xf32>
    %286 = math.exp %285 : vector<8x32xf32>
    %cst_194 = arith.constant 1.000000e+00 : f32
    %287 = vector.broadcast %cst_194 : f32 to vector<8x32xf32>
    %288 = arith.addf %287, %286 : vector<8x32xf32>
    %289 = arith.divf %287, %288 : vector<8x32xf32>
    %290 = arith.negf %276 : vector<8x32xf32>
    %291 = math.exp %290 : vector<8x32xf32>
    %cst_195 = arith.constant 1.000000e+00 : f32
    %292 = vector.broadcast %cst_195 : f32 to vector<8x32xf32>
    %293 = arith.addf %292, %291 : vector<8x32xf32>
    %294 = arith.divf %292, %293 : vector<8x32xf32>
    %295 = math.tanh %280 : vector<8x32xf32>
    %296 = arith.negf %284 : vector<8x32xf32>
    %297 = math.exp %296 : vector<8x32xf32>
    %cst_196 = arith.constant 1.000000e+00 : f32
    %298 = vector.broadcast %cst_196 : f32 to vector<8x32xf32>
    %299 = arith.addf %298, %297 : vector<8x32xf32>
    %300 = arith.divf %298, %299 : vector<8x32xf32>
    %301 = arith.mulf %294, %268 : vector<8x32xf32>
    %302 = arith.mulf %289, %295 : vector<8x32xf32>
    %303 = arith.addf %301, %302 : vector<8x32xf32>
    %304 = math.tanh %303 : vector<8x32xf32>
    %305 = arith.mulf %300, %304 : vector<8x32xf32>
    %c0_197 = arith.constant 0 : index
    %c0_198 = arith.constant 0 : index
    %306 = vector.load %arg19[%c0_197, %c0_198] : memref<8x32xf32, #tpu.memory_space<vmem>>, vector<8x32xf32>
    tpu.vector_store %arg19[%c0_197, %c0_198], %303 {strides = array<i32>} : memref<8x32xf32, #tpu.memory_space<vmem>>, vector<8x32xf32>,
    %c0_199 = arith.constant 0 : index
    %c0_200 = arith.constant 0 : index
    %307 = vector.load %arg18[%c0_199, %c0_200] : memref<8x32xf32, #tpu.memory_space<vmem>>, vector<8x32xf32>
    tpu.vector_store %arg18[%c0_199, %c0_200], %305 {strides = array<i32>} : memref<8x32xf32, #tpu.memory_space<vmem>>, vector<8x32xf32>,
    %c1_i32_201 = arith.constant 1 : i32
    %c8_i32_202 = arith.constant 8 : i32
    %308 = arith.muli %c1_i32_201, %c8_i32_202 : i32
    %309 = tpu.assume_multiple %308, 8 : i32
    %c0_203 = arith.constant 0 : index
    %c0_204 = arith.constant 0 : index
    %310 = vector.load %arg18[%c0_203, %c0_204] : memref<8x32xf32, #tpu.memory_space<vmem>>, vector<8x32xf32>
    %c0_205 = arith.constant 0 : index
    %c0_206 = arith.constant 0 : index
    %311 = vector.load %arg19[%c0_205, %c0_206] : memref<8x32xf32, #tpu.memory_space<vmem>>, vector<8x32xf32>
    %312 = arith.index_cast %309 : i32 to index
    %c0_207 = arith.constant 0 : index
    %313 = vector.load %arg11[%312, %c0_207] : memref<32x32xf32, #tpu.memory_space<vmem>>, vector<8x32xf32>
    %cst_208 = arith.constant dense<0.000000e+00> : vector<8x32xf32>
    %314 = tpu.matmul %310, %258, %cst_208 {dimension_numbers = #tpu.dot_dimension_numbers<[1], [0], [0], [1], [0, 0, 1, 1], [], []>} : vector<8x32xf32>, vector<32x32xf32>, vector<8x32xf32> -> vector<8x32xf32>
    %315 = arith.addf %313, %314 : vector<8x32xf32>
    %316 = arith.index_cast %309 : i32 to index
    %c0_209 = arith.constant 0 : index
    %317 = vector.load %arg12[%316, %c0_209] : memref<32x32xf32, #tpu.memory_space<vmem>>, vector<8x32xf32>
    %cst_210 = arith.constant dense<0.000000e+00> : vector<8x32xf32>
    %318 = tpu.matmul %310, %260, %cst_210 {dimension_numbers = #tpu.dot_dimension_numbers<[1], [0], [0], [1], [0, 0, 1, 1], [], []>} : vector<8x32xf32>, vector<32x32xf32>, vector<8x32xf32> -> vector<8x32xf32>
    %319 = arith.addf %317, %318 : vector<8x32xf32>
    %320 = arith.index_cast %309 : i32 to index
    %c0_211 = arith.constant 0 : index
    %321 = vector.load %arg13[%320, %c0_211] : memref<32x32xf32, #tpu.memory_space<vmem>>, vector<8x32xf32>
    %cst_212 = arith.constant dense<0.000000e+00> : vector<8x32xf32>
    %322 = tpu.matmul %310, %262, %cst_212 {dimension_numbers = #tpu.dot_dimension_numbers<[1], [0], [0], [1], [0, 0, 1, 1], [], []>} : vector<8x32xf32>, vector<32x32xf32>, vector<8x32xf32> -> vector<8x32xf32>
    %323 = arith.addf %321, %322 : vector<8x32xf32>
    %324 = arith.index_cast %309 : i32 to index
    %c0_213 = arith.constant 0 : index
    %325 = vector.load %arg14[%324, %c0_213] : memref<32x32xf32, #tpu.memory_space<vmem>>, vector<8x32xf32>
    %cst_214 = arith.constant dense<0.000000e+00> : vector<8x32xf32>
    %326 = tpu.matmul %310, %264, %cst_214 {dimension_numbers = #tpu.dot_dimension_numbers<[1], [0], [0], [1], [0, 0, 1, 1], [], []>} : vector<8x32xf32>, vector<32x32xf32>, vector<8x32xf32> -> vector<8x32xf32>
    %327 = arith.addf %325, %326 : vector<8x32xf32>
    %328 = arith.negf %315 : vector<8x32xf32>
    %329 = math.exp %328 : vector<8x32xf32>
    %cst_215 = arith.constant 1.000000e+00 : f32
    %330 = vector.broadcast %cst_215 : f32 to vector<8x32xf32>
    %331 = arith.addf %330, %329 : vector<8x32xf32>
    %332 = arith.divf %330, %331 : vector<8x32xf32>
    %333 = arith.negf %319 : vector<8x32xf32>
    %334 = math.exp %333 : vector<8x32xf32>
    %cst_216 = arith.constant 1.000000e+00 : f32
    %335 = vector.broadcast %cst_216 : f32 to vector<8x32xf32>
    %336 = arith.addf %335, %334 : vector<8x32xf32>
    %337 = arith.divf %335, %336 : vector<8x32xf32>
    %338 = math.tanh %323 : vector<8x32xf32>
    %339 = arith.negf %327 : vector<8x32xf32>
    %340 = math.exp %339 : vector<8x32xf32>
    %cst_217 = arith.constant 1.000000e+00 : f32
    %341 = vector.broadcast %cst_217 : f32 to vector<8x32xf32>
    %342 = arith.addf %341, %340 : vector<8x32xf32>
    %343 = arith.divf %341, %342 : vector<8x32xf32>
    %344 = arith.mulf %337, %311 : vector<8x32xf32>
    %345 = arith.mulf %332, %338 : vector<8x32xf32>
    %346 = arith.addf %344, %345 : vector<8x32xf32>
    %347 = math.tanh %346 : vector<8x32xf32>
    %348 = arith.mulf %343, %347 : vector<8x32xf32>
    %c0_218 = arith.constant 0 : index
    %c0_219 = arith.constant 0 : index
    %349 = vector.load %arg19[%c0_218, %c0_219] : memref<8x32xf32, #tpu.memory_space<vmem>>, vector<8x32xf32>
    tpu.vector_store %arg19[%c0_218, %c0_219], %346 {strides = array<i32>} : memref<8x32xf32, #tpu.memory_space<vmem>>, vector<8x32xf32>,
    %c0_220 = arith.constant 0 : index
    %c0_221 = arith.constant 0 : index
    %350 = vector.load %arg18[%c0_220, %c0_221] : memref<8x32xf32, #tpu.memory_space<vmem>>, vector<8x32xf32>
    tpu.vector_store %arg18[%c0_220, %c0_221], %348 {strides = array<i32>} : memref<8x32xf32, #tpu.memory_space<vmem>>, vector<8x32xf32>,
    %c2_i32_222 = arith.constant 2 : i32
    %c8_i32_223 = arith.constant 8 : i32
    %351 = arith.muli %c2_i32_222, %c8_i32_223 : i32
    %352 = tpu.assume_multiple %351, 8 : i32
    %c0_224 = arith.constant 0 : index
    %c0_225 = arith.constant 0 : index
    %353 = vector.load %arg18[%c0_224, %c0_225] : memref<8x32xf32, #tpu.memory_space<vmem>>, vector<8x32xf32>
    %c0_226 = arith.constant 0 : index
    %c0_227 = arith.constant 0 : index
    %354 = vector.load %arg19[%c0_226, %c0_227] : memref<8x32xf32, #tpu.memory_space<vmem>>, vector<8x32xf32>
    %355 = arith.index_cast %352 : i32 to index
    %c0_228 = arith.constant 0 : index
    %356 = vector.load %arg11[%355, %c0_228] : memref<32x32xf32, #tpu.memory_space<vmem>>, vector<8x32xf32>
    %cst_229 = arith.constant dense<0.000000e+00> : vector<8x32xf32>
    %357 = tpu.matmul %353, %258, %cst_229 {dimension_numbers = #tpu.dot_dimension_numbers<[1], [0], [0], [1], [0, 0, 1, 1], [], []>} : vector<8x32xf32>, vector<32x32xf32>, vector<8x32xf32> -> vector<8x32xf32>
    %358 = arith.addf %356, %357 : vector<8x32xf32>
    %359 = arith.index_cast %352 : i32 to index
    %c0_230 = arith.constant 0 : index
    %360 = vector.load %arg12[%359, %c0_230] : memref<32x32xf32, #tpu.memory_space<vmem>>, vector<8x32xf32>
    %cst_231 = arith.constant dense<0.000000e+00> : vector<8x32xf32>
    %361 = tpu.matmul %353, %260, %cst_231 {dimension_numbers = #tpu.dot_dimension_numbers<[1], [0], [0], [1], [0, 0, 1, 1], [], []>} : vector<8x32xf32>, vector<32x32xf32>, vector<8x32xf32> -> vector<8x32xf32>
    %362 = arith.addf %360, %361 : vector<8x32xf32>
    %363 = arith.index_cast %352 : i32 to index
    %c0_232 = arith.constant 0 : index
    %364 = vector.load %arg13[%363, %c0_232] : memref<32x32xf32, #tpu.memory_space<vmem>>, vector<8x32xf32>
    %cst_233 = arith.constant dense<0.000000e+00> : vector<8x32xf32>
    %365 = tpu.matmul %353, %262, %cst_233 {dimension_numbers = #tpu.dot_dimension_numbers<[1], [0], [0], [1], [0, 0, 1, 1], [], []>} : vector<8x32xf32>, vector<32x32xf32>, vector<8x32xf32> -> vector<8x32xf32>
    %366 = arith.addf %364, %365 : vector<8x32xf32>
    %367 = arith.index_cast %352 : i32 to index
    %c0_234 = arith.constant 0 : index
    %368 = vector.load %arg14[%367, %c0_234] : memref<32x32xf32, #tpu.memory_space<vmem>>, vector<8x32xf32>
    %cst_235 = arith.constant dense<0.000000e+00> : vector<8x32xf32>
    %369 = tpu.matmul %353, %264, %cst_235 {dimension_numbers = #tpu.dot_dimension_numbers<[1], [0], [0], [1], [0, 0, 1, 1], [], []>} : vector<8x32xf32>, vector<32x32xf32>, vector<8x32xf32> -> vector<8x32xf32>
    %370 = arith.addf %368, %369 : vector<8x32xf32>
    %371 = arith.negf %358 : vector<8x32xf32>
    %372 = math.exp %371 : vector<8x32xf32>
    %cst_236 = arith.constant 1.000000e+00 : f32
    %373 = vector.broadcast %cst_236 : f32 to vector<8x32xf32>
    %374 = arith.addf %373, %372 : vector<8x32xf32>
    %375 = arith.divf %373, %374 : vector<8x32xf32>
    %376 = arith.negf %362 : vector<8x32xf32>
    %377 = math.exp %376 : vector<8x32xf32>
    %cst_237 = arith.constant 1.000000e+00 : f32
    %378 = vector.broadcast %cst_237 : f32 to vector<8x32xf32>
    %379 = arith.addf %378, %377 : vector<8x32xf32>
    %380 = arith.divf %378, %379 : vector<8x32xf32>
    %381 = math.tanh %366 : vector<8x32xf32>
    %382 = arith.negf %370 : vector<8x32xf32>
    %383 = math.exp %382 : vector<8x32xf32>
    %cst_238 = arith.constant 1.000000e+00 : f32
    %384 = vector.broadcast %cst_238 : f32 to vector<8x32xf32>
    %385 = arith.addf %384, %383 : vector<8x32xf32>
    %386 = arith.divf %384, %385 : vector<8x32xf32>
    %387 = arith.mulf %380, %354 : vector<8x32xf32>
    %388 = arith.mulf %375, %381 : vector<8x32xf32>
    %389 = arith.addf %387, %388 : vector<8x32xf32>
    %390 = math.tanh %389 : vector<8x32xf32>
    %391 = arith.mulf %386, %390 : vector<8x32xf32>
    %c0_239 = arith.constant 0 : index
    %c0_240 = arith.constant 0 : index
    %392 = vector.load %arg19[%c0_239, %c0_240] : memref<8x32xf32, #tpu.memory_space<vmem>>, vector<8x32xf32>
    tpu.vector_store %arg19[%c0_239, %c0_240], %389 {strides = array<i32>} : memref<8x32xf32, #tpu.memory_space<vmem>>, vector<8x32xf32>,
    %c0_241 = arith.constant 0 : index
    %c0_242 = arith.constant 0 : index
    %393 = vector.load %arg18[%c0_241, %c0_242] : memref<8x32xf32, #tpu.memory_space<vmem>>, vector<8x32xf32>
    tpu.vector_store %arg18[%c0_241, %c0_242], %391 {strides = array<i32>} : memref<8x32xf32, #tpu.memory_space<vmem>>, vector<8x32xf32>,
    %c3_i32_243 = arith.constant 3 : i32
    %c8_i32_244 = arith.constant 8 : i32
    %394 = arith.muli %c3_i32_243, %c8_i32_244 : i32
    %395 = tpu.assume_multiple %394, 8 : i32
    %c0_245 = arith.constant 0 : index
    %c0_246 = arith.constant 0 : index
    %396 = vector.load %arg18[%c0_245, %c0_246] : memref<8x32xf32, #tpu.memory_space<vmem>>, vector<8x32xf32>
    %c0_247 = arith.constant 0 : index
    %c0_248 = arith.constant 0 : index
    %397 = vector.load %arg19[%c0_247, %c0_248] : memref<8x32xf32, #tpu.memory_space<vmem>>, vector<8x32xf32>
    %398 = arith.index_cast %395 : i32 to index
    %c0_249 = arith.constant 0 : index
    %399 = vector.load %arg11[%398, %c0_249] : memref<32x32xf32, #tpu.memory_space<vmem>>, vector<8x32xf32>
    %cst_250 = arith.constant dense<0.000000e+00> : vector<8x32xf32>
    %400 = tpu.matmul %396, %258, %cst_250 {dimension_numbers = #tpu.dot_dimension_numbers<[1], [0], [0], [1], [0, 0, 1, 1], [], []>} : vector<8x32xf32>, vector<32x32xf32>, vector<8x32xf32> -> vector<8x32xf32>
    %401 = arith.addf %399, %400 : vector<8x32xf32>
    %402 = arith.index_cast %395 : i32 to index
    %c0_251 = arith.constant 0 : index
    %403 = vector.load %arg12[%402, %c0_251] : memref<32x32xf32, #tpu.memory_space<vmem>>, vector<8x32xf32>
    %cst_252 = arith.constant dense<0.000000e+00> : vector<8x32xf32>
    %404 = tpu.matmul %396, %260, %cst_252 {dimension_numbers = #tpu.dot_dimension_numbers<[1], [0], [0], [1], [0, 0, 1, 1], [], []>} : vector<8x32xf32>, vector<32x32xf32>, vector<8x32xf32> -> vector<8x32xf32>
    %405 = arith.addf %403, %404 : vector<8x32xf32>
    %406 = arith.index_cast %395 : i32 to index
    %c0_253 = arith.constant 0 : index
    %407 = vector.load %arg13[%406, %c0_253] : memref<32x32xf32, #tpu.memory_space<vmem>>, vector<8x32xf32>
    %cst_254 = arith.constant dense<0.000000e+00> : vector<8x32xf32>
    %408 = tpu.matmul %396, %262, %cst_254 {dimension_numbers = #tpu.dot_dimension_numbers<[1], [0], [0], [1], [0, 0, 1, 1], [], []>} : vector<8x32xf32>, vector<32x32xf32>, vector<8x32xf32> -> vector<8x32xf32>
    %409 = arith.addf %407, %408 : vector<8x32xf32>
    %410 = arith.index_cast %395 : i32 to index
    %c0_255 = arith.constant 0 : index
    %411 = vector.load %arg14[%410, %c0_255] : memref<32x32xf32, #tpu.memory_space<vmem>>, vector<8x32xf32>
    %cst_256 = arith.constant dense<0.000000e+00> : vector<8x32xf32>
    %412 = tpu.matmul %396, %264, %cst_256 {dimension_numbers = #tpu.dot_dimension_numbers<[1], [0], [0], [1], [0, 0, 1, 1], [], []>} : vector<8x32xf32>, vector<32x32xf32>, vector<8x32xf32> -> vector<8x32xf32>
    %413 = arith.addf %411, %412 : vector<8x32xf32>
    %414 = arith.negf %401 : vector<8x32xf32>
    %415 = math.exp %414 : vector<8x32xf32>
    %cst_257 = arith.constant 1.000000e+00 : f32
    %416 = vector.broadcast %cst_257 : f32 to vector<8x32xf32>
    %417 = arith.addf %416, %415 : vector<8x32xf32>
    %418 = arith.divf %416, %417 : vector<8x32xf32>
    %419 = arith.negf %405 : vector<8x32xf32>
    %420 = math.exp %419 : vector<8x32xf32>
    %cst_258 = arith.constant 1.000000e+00 : f32
    %421 = vector.broadcast %cst_258 : f32 to vector<8x32xf32>
    %422 = arith.addf %421, %420 : vector<8x32xf32>
    %423 = arith.divf %421, %422 : vector<8x32xf32>
    %424 = math.tanh %409 : vector<8x32xf32>
    %425 = arith.negf %413 : vector<8x32xf32>
    %426 = math.exp %425 : vector<8x32xf32>
    %cst_259 = arith.constant 1.000000e+00 : f32
    %427 = vector.broadcast %cst_259 : f32 to vector<8x32xf32>
    %428 = arith.addf %427, %426 : vector<8x32xf32>
    %429 = arith.divf %427, %428 : vector<8x32xf32>
    %430 = arith.mulf %423, %397 : vector<8x32xf32>
    %431 = arith.mulf %418, %424 : vector<8x32xf32>
    %432 = arith.addf %430, %431 : vector<8x32xf32>
    %433 = math.tanh %432 : vector<8x32xf32>
    %434 = arith.mulf %429, %433 : vector<8x32xf32>
    %c0_260 = arith.constant 0 : index
    %c0_261 = arith.constant 0 : index
    %435 = vector.load %arg19[%c0_260, %c0_261] : memref<8x32xf32, #tpu.memory_space<vmem>>, vector<8x32xf32>
    tpu.vector_store %arg19[%c0_260, %c0_261], %432 {strides = array<i32>} : memref<8x32xf32, #tpu.memory_space<vmem>>, vector<8x32xf32>,
    %c0_262 = arith.constant 0 : index
    %c0_263 = arith.constant 0 : index
    %436 = vector.load %arg18[%c0_262, %c0_263] : memref<8x32xf32, #tpu.memory_space<vmem>>, vector<8x32xf32>
    tpu.vector_store %arg18[%c0_262, %c0_263], %434 {strides = array<i32>} : memref<8x32xf32, #tpu.memory_space<vmem>>, vector<8x32xf32>,
    %c4_i32_264 = arith.constant 4 : i32
    %c1_i32_265 = arith.constant 1 : i32
    %437 = arith.cmpi eq, %arg0, %c1_i32_265 : i32
    %438 = arith.extui %437 : i1 to i32
    %c0_i32_266 = arith.constant 0 : i32
    %439 = arith.cmpi ne, %438, %c0_i32_266 : i32
    scf.if %439 {
      %c0_267 = arith.constant 0 : index
      %c0_268 = arith.constant 0 : index
      %440 = vector.load %arg18[%c0_267, %c0_268] : memref<8x32xf32, #tpu.memory_space<vmem>>, vector<8x32xf32>
      %c0_269 = arith.constant 0 : index
      %c0_270 = arith.constant 0 : index
      %441 = vector.load %arg8[%c0_269, %c0_270] : memref<32x1xf32, #tpu.memory_space<vmem>>, vector<32x1xf32>
      %cst_271 = arith.constant dense<0.000000e+00> : vector<8x1xf32>
      %442 = tpu.matmul %440, %441, %cst_271 {dimension_numbers = #tpu.dot_dimension_numbers<[1], [0], [0], [1], [0, 0, 1, 1], [], []>} : vector<8x32xf32>, vector<32x1xf32>, vector<8x1xf32> -> vector<8x1xf32>
      %c0_272 = arith.constant 0 : index
      %c0_273 = arith.constant 0 : index
      %443 = vector.load %arg9[%c0_272, %c0_273] : memref<1x1xf32, #tpu.memory_space<vmem>>, vector<1x1xf32>
      %444 = vector.broadcast %443 : vector<1x1xf32> to vector<8x1xf32>
      %445 = arith.addf %442, %444 : vector<8x1xf32>
      %446 = arith.negf %445 : vector<8x1xf32>
      %447 = math.exp %446 : vector<8x1xf32>
      %cst_274 = arith.constant 1.000000e+00 : f32
      %448 = vector.broadcast %cst_274 : f32 to vector<8x1xf32>
      %449 = arith.addf %448, %447 : vector<8x1xf32>
      %450 = arith.divf %448, %449 : vector<8x1xf32>
      %c0_275 = arith.constant 0 : index
      %c0_276 = arith.constant 0 : index
      %451 = vector.load %arg10[%c0_275, %c0_276] : memref<8x1xf32, #tpu.memory_space<vmem>>, vector<8x1xf32>
      tpu.vector_store %arg10[%c0_275, %c0_276], %450 {strides = array<i32>} : memref<8x1xf32, #tpu.memory_space<vmem>>, vector<8x1xf32>,
    } else {
    }
    return
  }
  func.func @transform_0(%arg0: i32) -> (i32, i32) {
    %c0_i32 = arith.constant 0 : i32
    %c0_i32_0 = arith.constant 0 : i32
    return %arg0, %c0_i32 : i32, i32
  }
  func.func @transform_1(%arg0: i32) -> (i32, i32, i32) {
    %c0_i32 = arith.constant 0 : i32
    %c0_i32_0 = arith.constant 0 : i32
    %c0_i32_1 = arith.constant 0 : i32
    %c0_i32_2 = arith.constant 0 : i32
    return %c0_i32, %c0_i32_0, %c0_i32_1 : i32, i32, i32
  }
  func.func @transform_2(%arg0: i32) -> (i32, i32, i32) {
    %c0_i32 = arith.constant 0 : i32
    %c0_i32_0 = arith.constant 0 : i32
    %c0_i32_1 = arith.constant 0 : i32
    %c0_i32_2 = arith.constant 0 : i32
    return %c0_i32, %c0_i32_0, %c0_i32_1 : i32, i32, i32
  }
  func.func @transform_3(%arg0: i32) -> (i32, i32, i32) {
    %c0_i32 = arith.constant 0 : i32
    %c0_i32_0 = arith.constant 0 : i32
    %c0_i32_1 = arith.constant 0 : i32
    %c0_i32_2 = arith.constant 0 : i32
    return %c0_i32, %c0_i32_0, %c0_i32_1 : i32, i32, i32
  }
  func.func @transform_4(%arg0: i32) -> (i32, i32, i32) {
    %c0_i32 = arith.constant 0 : i32
    %c0_i32_0 = arith.constant 0 : i32
    %c0_i32_1 = arith.constant 0 : i32
    %c0_i32_2 = arith.constant 0 : i32
    return %c0_i32, %c0_i32_0, %c0_i32_1 : i32, i32, i32
  }
  func.func @transform_5(%arg0: i32) -> (i32, i32, i32) {
    %c0_i32 = arith.constant 0 : i32
    %c0_i32_0 = arith.constant 0 : i32
    %c0_i32_1 = arith.constant 0 : i32
    %c0_i32_2 = arith.constant 0 : i32
    return %c0_i32, %c0_i32_0, %c0_i32_1 : i32, i32, i32
  }
  func.func @transform_6(%arg0: i32) -> (i32, i32, i32) {
    %c0_i32 = arith.constant 0 : i32
    %c0_i32_0 = arith.constant 0 : i32
    %c0_i32_1 = arith.constant 0 : i32
    %c0_i32_2 = arith.constant 0 : i32
    return %c0_i32, %c0_i32_0, %c0_i32_1 : i32, i32, i32
  }
  func.func @transform_7(%arg0: i32) -> (i32, i32) {
    %c0_i32 = arith.constant 0 : i32
    %c0_i32_0 = arith.constant 0 : i32
    %c0_i32_1 = arith.constant 0 : i32
    return %c0_i32, %c0_i32_0 : i32, i32
  }
  func.func @transform_8(%arg0: i32) -> (i32, i32) {
    %c0_i32 = arith.constant 0 : i32
    %c0_i32_0 = arith.constant 0 : i32
    %c0_i32_1 = arith.constant 0 : i32
    return %c0_i32, %c0_i32_0 : i32, i32
  }
  func.func @transform_9(%arg0: i32) -> (i32, i32) {
    %c0_i32 = arith.constant 0 : i32
    %c0_i32_0 = arith.constant 0 : i32
    %c0_i32_1 = arith.constant 0 : i32
    return %c0_i32, %c0_i32_0 : i32, i32
  }
}

</mosaic_0001>

<bundles_post_ra>
// kernel: sentiment_lstm_forward.1
= control target key start
LH: loop header
LB: loop body
LE: loop exit
PB: predicated region body
PF: predicated region fallthrough
CT: control target
= control target key end

     0   :  { %s5935_s0 = inlined_call_operand.vmem [shape: f32[64,32], index: 0, kind: input, shape index: {}]   ;;  %s5936_s1 = inlined_call_operand.vmem [shape: f32[4,32,32], index: 1, kind: input, shape index: {}]   ;;  %s5937_s2 = inlined_call_operand.vmem [shape: f32[4,32,32], index: 2, kind: input, shape index: {}]   ;;  %s5938_s3 = inlined_call_operand.vmem [shape: f32[4,1,32], index: 3, kind: input, shape index: {}]   ;;  %s5939_s4 = inlined_call_operand.vmem [shape: f32[4,32,32], index: 4, kind: input, shape index: {}]   ;;  %s5940_s5 = inlined_call_operand.hbm [shape: f32[4,32,32], index: 5, kind: input, shape index: {}]   ;;  %s5941_s6 = inlined_call_operand.vmem [shape: f32[4,1,32], index: 6, kind: input, shape index: {}]   ;;  %s5942_s7 = inlined_call_operand.vmem [shape: f32[32,1], index: 7, kind: input, shape index: {}]   ;;  %s5943_s8 = inlined_call_operand.<no memory space> [shape: f32[1,1], index: 8, kind: input, shape index: {}]   ;;  %s5944_s9 = inlined_call_operand.vmem [shape: f32[8,1], index: 9, kind: output, shape index: {}]  }
   0x1   :  { %v14_v0 = vstv %s5943_s8 }
   0x2   :  { %15 = vst [vmem:[#allocation11] sm:$0x1] %v14_v0 }
   0x3   :  { %16 = vsyncpa [#allocation13], 0  ;;  %s5319_s11 = smov 0  }
   0x4 LB: > { %s5325_s12 = sadd.s32 4294967295, %s5254_s11   ;;  %p3938_p0 = scmp.ge.s32.totalorder %s5254_s11, 1  ;;  %s5254_s11 = sphi %s5319_s11, %s22_s11  }
   0x5   : > { %p242_p1 = scmp.lt.s32.totalorder %s5254_s11, 3  ;;  %s5256_s8 = smov [#allocation12]  }
   0x6   : > { %s266_s13 = sshll.u32 %s5256_s8, 4  ;;  %p5945_p4 = scmp.eq.s32.totalorder %s5325_s12, 0  ;;  %s267_s13 = int_to_ptr.vmem [resolvable:$true] %s266_s13 }
   0x7   : > { %p5330_p3 = pnand %p3938_p0, %p242_p1  ;;  %s5216_s18 = scalar_lea.hbm %s5940_s5, 2048 }
   0x8   : > { %p5217_p7 = scmp.ne.s32.totalorder %s5940_s5, %s5216_s18  ;;  %p5223_p11 = scmp.lt.u32.totalorder %s5216_s18, %s5940_s5 }
   0x9   : > { %s5947_s14 = scalar_select %p5330_p3, 1, 0 }
   0xa   : > { %p5060_p5 = pneg %p5330_p3 }
   0xc   : > { %p5339_p6 = pnand %p5945_p4, %p5060_p5 }
   0xe   : > { %p5218_p8 = pneg %p5339_p6 }
  0x10   : > { %p5219_p9 = pnand %p5218_p8, %p5217_p7 }
  0x12   : > { %p5220_p10 = pneg %p5219_p9 }
  0x14   : > { %p5225_p12 = pnand %p5223_p11, %p5220_p10 }
  0x16   : > { %5228 = shalt.err (!%p5225_p12)
}
  0x17   : > { %s5229_s23 = scalar_lea.vmem %s267_s13, 2048  ;;  %p5237_p5 = scmp.lt.s32.totalorder %s267_s13, %s267_s13 }
  0x18   : > { %p5230_p13 = scmp.ne.s32.totalorder %s267_s13, %s5229_s23  ;;  %p5238_p2 = scmp.lt.s32.totalorder %s5229_s23, %s5229_s23 }
  0x1a   : > { %p5232_p0 = pnand %p5230_p13, %p5218_p8  ;;  %p5239_p4 = por %p5238_p2, %p5237_p5 }
  0x1c   : > { %p5233_p1 = pneg %p5232_p0 }
  0x1e   : > { %p5240_p3 = pnand %p5239_p4, %p5233_p1 }
  0x20   : > { %5243 = shalt.err (!%p5240_p3)
}
  0x21   : > { %s5257_s24 = smov 128   ;;  %s5258_s25 = smov 8  }
  0x22   : > { %5063 = dma.hbm_to_vmem [thread:$0]  (!%p5339_p6), %s5940_s5, 2048, %s267_s13, [#allocation13], %s5257_s24, %s5257_s24, %s5258_s25  }
  0x23   : > { %p5949_p7 = scmp.ne.s32.totalorder %s5947_s14, 0 }
  0x24   : > { %p5950_p9 = scmp.eq.s32.totalorder (!%p5949_p7), %s5325_s12, 0 }
  0x25   : > { %300 = sbr.rel (%p5949_p7) target bundleno = 2462 (0x99e), region = 56 }
  0x2c   : > { %5249 = dma.done.wait (%p5950_p9), [#allocation13], 2048   ;;  %p5951_p8 = pmov %p5950_p9 }
  0x2d   : > { %s3943_s28 = sshll.u32 %s5325_s12, 2  ;;  %p5952_p3 = scmp.ne.s32.totalorder %s5325_s12, 0 }
  0x2e   : > { %5251 = vsyncadd (%p5951_p8), [#allocation13], 4294965248  ;;  %p332_p2 = scmp.lt.s32.totalorder %s3943_s28, 7  ;;  %vm341_vm0 = vcmask (!%p5952_p3), 261120   ;;  %v5259_v1 = vmov (!%p5952_p3), 0.0  }
  0x2f   : > { %340 = sbr.rel (%p5952_p3) target bundleno = 54 (0x36), region = 64  ;;  %342 = vst.msk [vmem:[#allocation7] sm:$0xff] (!%p5952_p3), %vm341_vm0, %v5259_v1  ;;  %343 = vst.msk [vmem:[#allocation8] sm:$0xff] (!%p5952_p3), %vm341_vm0, %v5259_v1 }
  0x30   : > { %s5954_s28 = smov (!%p332_p2, %s3943_s28), 7  ;;  %344 = vst.msk [vmem:[#allocation9] sm:$0xff] (!%p5952_p3), %vm341_vm0, %v5259_v1  ;;  %345 = vst.msk [vmem:[#allocation10] sm:$0xff] (!%p5952_p3), %vm341_vm0, %v5259_v1 }
  0x31   : > { %s3944_s29 = sshll.u32 %s5954_s28, 3 }
  0x32   : > { %s5369_s8 = scalar_lea.vmem %s5935_s0, %s3944_s29 }
  0x36 PF: > { %v350_v2 = vld [vmem:[%s5936_s1] sm:$0xff]  ;;  %v351_v3 = vld [vmem:[%s5936_s1 + $0x8] sm:$0xff]  ;;  %vm361_vm1 = vcmask 261120   ;;  %v352_v7 = vld [vmem:[%s5936_s1 + $0x10] sm:$0xff]  ;;  %v5260_v38 = vmov 0.0|0.0   ;;  %vm5261_vm2 = vmmov 0  }
  0x37   : > { %v3951_v4 = vld [vmem:[%s5936_s1 + $0x20] sm:$0xff]  ;;  %v4794_v5 = vpack.c.bf16 %v351_v3, %v350_v2  ;;  %v3952_v6 = vld [vmem:[%s5936_s1 + $0x28] sm:$0xff]  ;;  %v353_v8 = vld [vmem:[%s5936_s1 + $0x18] sm:$0xff]  ;;  %v5262_v49 = vmov 0.0   ;;  %p4084_p4 = scmp.ne.s32.totalorder %s5325_s12, 1 }
  0x38   : > { %v4802_v9 = vpack.c.bf16 %v3952_v6, %v3951_v4  ;;  %v4798_v10 = vpack.c.bf16 %v353_v8, %v352_v7  ;;  %v3953_v11 = vld [vmem:[%s5936_s1 + $0x30] sm:$0xff]  ;;  %v3954_v12 = vld [vmem:[%s5936_s1 + $0x38] sm:$0xff]  ;;  %v346_v13 = vld [vmem:[%s5369_s8] sm:$0xff]  ;;  %vm5264_vm3 = vmmov (!%p4084_p4), 0   ;;  %vm3895_vm4 = vcmask (!%p4084_p4), 7168  }
  0x39   : > { %4795 = vmatprep.subr.bf16.mxu0 %v4794_v5  ;;  %v4806_v14 = vpack.c.bf16 %v3954_v12, %v3953_v11  ;;  %4327 = vmatprep.mubr.msk.f32.mxu0 %vm361_vm1, %v346_v13  ;;  %v3961_v15 = vld [vmem:[%s5936_s1 + $0x40] sm:$0xff]  ;;  %v3962_v16 = vld [vmem:[%s5936_s1 + $0x48] sm:$0xff]  ;;  %v3963_v21 = vld [vmem:[%s5936_s1 + $0x50] sm:$0xff] }
  0x3a   : > { %4803 = vmatprep.subr.bf16.mxu1 %v4802_v9  ;;  %4797 = vmatpush3.bf16.msra.mxu0 %v4794_v5  ;;  %v3971_v17 = vld [vmem:[%s5936_s1 + $0x60] sm:$0xff]  ;;  %v3972_v18 = vld [vmem:[%s5936_s1 + $0x68] sm:$0xff]  ;;  %v4810_v19 = vpack.c.bf16 %v3962_v16, %v3961_v15  ;;  %v3964_v22 = vld [vmem:[%s5936_s1 + $0x58] sm:$0xff] }
  0x3b   : > { %4805 = vmatpush3.bf16.msra.mxu1 %v4802_v9  ;;  %4799 = vmatprep.subr.bf16.mxu0 %v4798_v10  ;;  %v4818_v20 = vpack.c.bf16 %v3972_v18, %v3971_v17  ;;  %v347_v23 = vld [vmem:[%s5369_s8 + $0x8] sm:$0xff]  ;;  %v3973_v24 = vld [vmem:[%s5936_s1 + $0x70] sm:$0xff]  ;;  %v3974_v25 = vld [vmem:[%s5936_s1 + $0x78] sm:$0xff]  ;;  %v4814_v27 = vpack.c.bf16 %v3964_v22, %v3963_v21 }
  0x3c   : > { %4807 = vmatprep.subr.bf16.mxu1 %v4806_v14  ;;  %4341 = vmatprep.mubr.msk.f32.mxu1 %vm361_vm1, %v346_v13  ;;  %v348_v26 = vld [vmem:[%s5369_s8 + $0x10] sm:$0xff]  ;;  %v4822_v28 = vpack.c.bf16 %v3974_v25, %v3973_v24  ;;  %v349_v29 = vld [vmem:[%s5369_s8 + $0x18] sm:$0xff]  ;;  %v769_v30 = vld [vmem:[%s5937_s2] sm:$0xff] }
  0x3d   : > { %v770_v31 = vld [vmem:[%s5937_s2 + $0x8] sm:$0xff]  ;;  %v3981_v32 = vld [vmem:[%s5937_s2 + $0x20] sm:$0xff]  ;;  %v771_v36 = vld [vmem:[%s5937_s2 + $0x10] sm:$0xff] }
  0x3e   : > { %4801 = vmatpush3.bf16.msra.mxu0 %v4798_v10  ;;  %v3982_v33 = vld [vmem:[%s5937_s2 + $0x28] sm:$0xff]  ;;  %v5445_v34 = vpack.c.bf16 %v770_v31, %v769_v30  ;;  %v772_v37 = vld [vmem:[%s5937_s2 + $0x18] sm:$0xff]  ;;  %v3983_v39 = vld [vmem:[%s5937_s2 + $0x30] sm:$0xff] }
  0x3f   : > { %4809 = vmatpush3.bf16.msra.mxu1 %v4806_v14  ;;  %4811 = vmatprep.subr.bf16.mxu0 %v4810_v19  ;;  %v5448_v35 = vpack.c.bf16 %v3982_v33, %v3981_v32  ;;  %v3984_v40 = vld [vmem:[%s5937_s2 + $0x38] sm:$0xff]  ;;  %v5468_v41 = vpack.c.bf16 %v772_v37, %v771_v36  ;;  %v3985_v43 = vld [vmem:[%s5937_s2 + $0x40] sm:$0xff]  ;;  %v3986_v44 = vld [vmem:[%s5937_s2 + $0x48] sm:$0xff] }
  0x40   : > { %4819 = vmatprep.subr.bf16.mxu1 %v4818_v20  ;;  %v5472_v42 = vpack.c.bf16 %v3984_v40, %v3983_v39  ;;  %v3989_v45 = vld [vmem:[%s5937_s2 + $0x60] sm:$0xff]  ;;  %v3990_v46 = vld [vmem:[%s5937_s2 + $0x68] sm:$0xff]  ;;  %v5492_v48 = vpack.c.bf16 %v3986_v44, %v3985_v43  ;;  %v3987_v51 = vld [vmem:[%s5937_s2 + $0x50] sm:$0xff] }
  0x41   : > { %4328 = vmatmul.mubr.msk.f32.vlgmr.msra.gmra.mrb[0].mxu0 %vm361_vm1, %v347_v23  ;;  %v788_v47 = vld [vmem:[#allocation7] sm:$0xff]  ;;  %v5497_v50 = vpack.c.bf16 %v3990_v46, %v3989_v45  ;;  %v3988_v52 = vld [vmem:[%s5937_s2 + $0x58] sm:$0xff]  ;;  %v3991_v53 = vld [vmem:[%s5937_s2 + $0x70] sm:$0xff] }
  0x42   : > { %4342 = vmatmul.mubr.msk.f32.vlgmr.msra.gmra.mrb[0].mxu1 %vm361_vm1, %v347_v23  ;;  %4813 = vmatpush3.bf16.msra.mxu0 %v4810_v19  ;;  %v3992_v54 = vld [vmem:[%s5937_s2 + $0x78] sm:$0xff]  ;;  %v5518_v55 = vpack.c.bf16 %v3988_v52, %v3987_v51  ;;  %v3946_v57 = vld [vmem:[%s5938_s3] ss:$0 sm:$0xff]  ;;  %v3956_v58 = vld [vmem:[%s5938_s3 + $0x1] ss:$0 sm:$0xff] }
  0x43   : > { %4821 = vmatpush3.bf16.msra.mxu1 %v4818_v20  ;;  %4330 = vmatprep.mubr.msk.f32.mxu0 %vm361_vm1, %v348_v26  ;;  %v5522_v56 = vpack.c.bf16 %v3992_v54, %v3991_v53  ;;  %v3966_v10 = vld [vmem:[%s5938_s3 + $0x2] ss:$0 sm:$0xff]  ;;  %v3976_v12 = vld [vmem:[%s5938_s3 + $0x3] ss:$0 sm:$0xff] }
  0x44   : > { %4344 = vmatprep.mubr.msk.f32.mxu1 %vm361_vm1, %v348_v26  ;;  %4815 = vmatprep.subr.bf16.mxu0 %v4814_v27 }
  0x45   : > { %4331 = vmatmul.mubr.msk.f32.gmra.mrb[2].mxu0 %vm361_vm1, %v349_v29  ;;  %4823 = vmatprep.subr.bf16.mxu1 %v4822_v28 }
  0x46   : > { %4345 = vmatmul.mubr.msk.f32.gmra.mrb[2].mxu1 %vm361_vm1, %v349_v29  ;;  %4817 = vmatpush3.bf16.msra.mxu0 %v4814_v27 }
  0x47   : > { %4825 = vmatpush3.bf16.msra.mxu1 %v4822_v28  ;;  %4355 = vmatprep.mubr.msk.f32.mxu0 %vm361_vm1, %v346_v13 }
  0x48   : > { %4369 = vmatprep.mubr.msk.f32.mxu1 %vm361_vm1, %v346_v13  ;;  %4826 = vmatprep.subr.bf16.mxu0 %v5260_v38 }
  0x49   : > { %4356 = vmatmul.mubr.msk.f32.vlgmr.msra.gmra.mrb[4].mxu0 %vm361_vm1, %v347_v23  ;;  %4832 = vmatprep.subr.bf16.mxu1 %v5260_v38 }
  0x4a   : > { %4370 = vmatmul.mubr.msk.f32.vlgmr.msra.gmra.mrb[4].mxu1 %vm361_vm1, %v347_v23  ;;  %4828 = vmatpush3.bf16.msra.mxu0 %v5445_v34 }
  0x4b   : > { %4834 = vmatpush3.bf16.msra.mxu1 %v5448_v35  ;;  %4358 = vmatprep.mubr.msk.f32.mxu0 %vm361_vm1, %v348_v26 }
  0x4c   : > { %4372 = vmatprep.mubr.msk.f32.mxu1 %vm361_vm1, %v348_v26  ;;  %4829 = vmatprep.subr.bf16.mxu0 %v5260_v38 }
  0x4d   : > { %4359 = vmatmul.mubr.msk.f32.gmra.mrb[6].mxu0 %vm361_vm1, %v349_v29  ;;  %4835 = vmatprep.subr.bf16.mxu1 %v5260_v38 }
  0x4e   : > { %4373 = vmatmul.mubr.msk.f32.gmra.mrb[6].mxu1 %vm361_vm1, %v349_v29  ;;  %4831 = vmatpush3.bf16.msra.mxu0 %v5468_v41 }
  0x4f   : > { %4837 = vmatpush3.bf16.msra.mxu1 %v5472_v42  ;;  %4383 = vmatprep.mubr.msk.f32.mxu0 %vm5261_vm2, %v5262_v49 }
  0x50   : > { %4394 = vmatprep.mubr.msk.f32.mxu1 %vm5261_vm2, %v5262_v49  ;;  %4838 = vmatprep.subr.bf16.mxu0 %v5260_v38 }
  0x51   : > { %4384 = vmatmul.mubr.msk.f32.vlgmr.msra.gmra.mrb[8].mxu0 %vm361_vm1, %v788_v47  ;;  %4844 = vmatprep.subr.bf16.mxu1 %v5260_v38 }
  0x52   : > { %4395 = vmatmul.mubr.msk.f32.vlgmr.msra.gmra.mrb[8].mxu1 %vm361_vm1, %v788_v47  ;;  %4840 = vmatpush3.bf16.msra.mxu0 %v5492_v48 }
  0x53   : > { %4846 = vmatpush3.bf16.msra.mxu1 %v5497_v50  ;;  %4841 = vmatprep.subr.bf16.mxu0 %v5260_v38 }
  0x54   : > { %4847 = vmatprep.subr.bf16.mxu1 %v5260_v38  ;;  %4405 = vmatprep.mubr.msk.f32.mxu0 %vm5261_vm2, %v5262_v49 }
  0x55   : > { %4416 = vmatprep.mubr.msk.f32.mxu1 %vm5261_vm2, %v5262_v49 }
  0x56   : > { %4843 = vmatpush3.bf16.msra.mxu0 %v5518_v55 }
  0x57   : > { %4849 = vmatpush3.bf16.msra.mxu1 %v5522_v56  ;;  %4850 = vmatprep.subr.bf16.mxu0 %v5260_v38 }
  0x58   : > { %4856 = vmatprep.subr.bf16.mxu1 %v5260_v38 }
  0x59   : > { %4406 = vmatmul.mubr.msk.f32.vlgmr.msra.gmra.mrb[10].mxu0 %vm361_vm1, %v788_v47 }
  0x5a   : > { %4417 = vmatmul.mubr.msk.f32.vlgmr.msra.gmra.mrb[10].mxu1 %vm361_vm1, %v788_v47  ;;  %4852 = vmatpush3.bf16.msra.mxu0 %v5445_v34 }
  0x5b   : > { %4858 = vmatpush3.bf16.msra.mxu1 %v5448_v35  ;;  %4853 = vmatprep.subr.bf16.mxu0 %v5260_v38 }
  0x5c   : > { %4859 = vmatprep.subr.bf16.mxu1 %v5260_v38  ;;  %4427 = vmatprep.mubr.msk.f32.mxu0 %vm5261_vm2, %v5262_v49 }
  0x5d   : > { %4438 = vmatprep.mubr.msk.f32.mxu1 %vm5261_vm2, %v5262_v49 }
  0x5e   : > { %4855 = vmatpush3.bf16.msra.mxu0 %v5468_v41 }
  0x5f   : > { %4861 = vmatpush3.bf16.msra.mxu1 %v5472_v42  ;;  %4862 = vmatprep.subr.bf16.mxu0 %v5260_v38 }
  0x60   : > { %4868 = vmatprep.subr.bf16.mxu1 %v5260_v38 }
 0x114   : > { %v4329_v59 = vpop.f32.mrb[0].mxu0 }
 0x115   : > { %v446_v60 = vadd.f32 %v4329_v59, %v3946_v57  ;;  %v4343_v61 = vpop.f32.mrb[0].mxu1  ;;  %v440_v62 = vpop.f32.mrb[1].mxu0 }
 0x116   : > { %v548_v63 = vadd.f32 %v4343_v61, %v3956_v58  ;;  %v441_v0 = vadd.f32 %v3946_v57, %v440_v62  ;;  %v542_v1 = vpop.f32.mrb[1].mxu1 }
 0x117   : > { %460 = vst.msk [vmem:[#allocation2 + $0x8] sm:$0xff] %vm361_vm1, %v446_v60  ;;  %v543_v2 = vadd.f32 %v3956_v58, %v542_v1 }
 0x118   : > { %562 = vst.msk [vmem:[#allocation3 + $0x8] sm:$0xff] %vm361_vm1, %v548_v63  ;;  %459 = vst.msk [vmem:[#allocation2] sm:$0xff] %vm361_vm1, %v441_v0  ;;  %v4332_v3 = vpop.f32.mrb[2].mxu0  ;;  %v789_v0 = vld [vmem:[#allocation8] sm:$0xff] }
 0x119   : > { %561 = vst.msk [vmem:[#allocation3] sm:$0xff] %vm361_vm1, %v543_v2  ;;  %v456_v4 = vadd.f32 %v4332_v3, %v3946_v57  ;;  %v4346_v5 = vpop.f32.mrb[2].mxu1  ;;  %v450_v6 = vpop.f32.mrb[3].mxu0 }
 0x11a   : > { %v558_v7 = vadd.f32 %v4346_v5, %v3956_v58  ;;  %v451_v8 = vadd.f32 %v3946_v57, %v450_v6  ;;  %v552_v9 = vpop.f32.mrb[3].mxu1 }
 0x11b   : > { %462 = vst.msk [vmem:[#allocation2 + $0x18] sm:$0xff] %vm361_vm1, %v456_v4  ;;  %v553_v11 = vadd.f32 %v3956_v58, %v552_v9 }
 0x11c   : > { %564 = vst.msk [vmem:[#allocation3 + $0x18] sm:$0xff] %vm361_vm1, %v558_v7  ;;  %461 = vst.msk [vmem:[#allocation2 + $0x10] sm:$0xff] %vm361_vm1, %v451_v8  ;;  %v4357_v13 = vpop.f32.mrb[4].mxu0 }
 0x11d   : > { %563 = vst.msk [vmem:[#allocation3 + $0x10] sm:$0xff] %vm361_vm1, %v553_v11  ;;  %v650_v14 = vadd.f32 %v4357_v13, %v3966_v10  ;;  %v4371_v15 = vpop.f32.mrb[4].mxu1  ;;  %v644_v16 = vpop.f32.mrb[5].mxu0 }
 0x11e   : > { %v752_v17 = vadd.f32 %v4371_v15, %v3976_v12  ;;  %v645_v18 = vadd.f32 %v3966_v10, %v644_v16  ;;  %v746_v19 = vpop.f32.mrb[5].mxu1  ;;  %v1111_v11 = vld [vmem:[#allocation2 + $0x8] sm:$0xff] }
 0x11f   : > { %664 = vst.msk [vmem:[#allocation4 + $0x8] sm:$0xff] %vm361_vm1, %v650_v14  ;;  %v747_v20 = vadd.f32 %v3976_v12, %v746_v19  ;;  %v790_v29 = vld [vmem:[#allocation2] sm:$0xff]  ;;  %v1187_v13 = vld [vmem:[#allocation3 + $0x8] sm:$0xff] }
 0x120   : > { %766 = vst.msk [vmem:[#allocation5 + $0x8] sm:$0xff] %vm361_vm1, %v752_v17  ;;  %663 = vst.msk [vmem:[#allocation4] sm:$0xff] %vm361_vm1, %v645_v18  ;;  %v4360_v21 = vpop.f32.mrb[6].mxu0  ;;  %v865_v32 = vld [vmem:[#allocation3] sm:$0xff] }
 0x121   : > { %765 = vst.msk [vmem:[#allocation5] sm:$0xff] %vm361_vm1, %v747_v20  ;;  %v660_v22 = vadd.f32 %v4360_v21, %v3966_v10  ;;  %v4374_v23 = vpop.f32.mrb[6].mxu1  ;;  %v654_v24 = vpop.f32.mrb[7].mxu0 }
 0x122   : > { %v762_v25 = vadd.f32 %v4374_v23, %v3976_v12  ;;  %v655_v26 = vadd.f32 %v3966_v10, %v654_v24  ;;  %v756_v27 = vpop.f32.mrb[7].mxu1 }
 0x123   : > { %666 = vst.msk [vmem:[#allocation4 + $0x18] sm:$0xff] %vm361_vm1, %v660_v22  ;;  %v757_v28 = vadd.f32 %v3976_v12, %v756_v27 }
 0x124   : > { %768 = vst.msk [vmem:[#allocation5 + $0x18] sm:$0xff] %vm361_vm1, %v762_v25  ;;  %665 = vst.msk [vmem:[#allocation4 + $0x10] sm:$0xff] %vm361_vm1, %v655_v26  ;;  %v860_v30 = vpop.f32.mrb[8].mxu0 }
 0x125   : > { %767 = vst.msk [vmem:[#allocation5 + $0x10] sm:$0xff] %vm361_vm1, %v757_v28  ;;  %v864_v31 = vadd.f32 %v860_v30, %v790_v29  ;;  %v932_v33 = vpop.f32.mrb[8].mxu1  ;;  %v4385_v36 = vpop.f32.mrb[9].mxu0 }
 0x126   : > { %v936_v37 = vadd.f32 %v932_v33, %v865_v32  ;;  %v4396_v39 = vpop.f32.mrb[9].mxu1  ;;  %v1260_v27 = vld [vmem:[#allocation4 + $0x8] sm:$0xff] }
 0x127   : > { %v3997_v40 = vmul.f32 -1.442695, %v864_v31  ;;  %v937_v53 = vld [vmem:[#allocation4] sm:$0xff]  ;;  %v1333_v22 = vld [vmem:[#allocation5 + $0x8] sm:$0xff] }
 0x128   : > { %v3998_v43 = vmul.f32 -1.442695, %v936_v37  ;;  %v1009_v45 = vld [vmem:[#allocation5] sm:$0xff] }
 0x129   : > { %5084 = vpow2.f32 %v3997_v40 }
 0x12a   : > { %5086 = vpow2.f32 %v3998_v43 }
 0x12c   : > { %v1004_v44 = vpop.f32.mrb[10].mxu0 }
 0x12d   : > { %v1076_v46 = vpop.f32.mrb[10].mxu1  ;;  %v4407_v47 = vpop.f32.mrb[11].mxu0  ;;  %v1008_v57 = vadd.f32 %v1004_v44, %v937_v53 }
 0x12e   : > { %v1080_v51 = vadd.f32 %v1076_v46, %v1009_v45  ;;  %v4418_v52 = vpop.f32.mrb[11].mxu1 }
 0x130   : > { %v3999_v54 = vmul.f32 -1.442695, %v1080_v51 }
 0x132   : > { %5088 = vpow2.f32 %v3999_v54 }
 0x133   : > { %v5085_v58 = vpop.eup %5084  ;;  %5090 = vtanh.f32 %v1008_v57  ;;  %v1512_v57 = vld [vmem:[#allocation3 + $0x10] sm:$0xff] }
 0x134   : > { %v5087_v59 = vpop.eup %5086  ;;  %v1084_v60 = vadd.f32 1.0, %v5085_v58 }
 0x135   : > { %v1090_v61 = vadd.f32 1.0, %v5087_v59 }
 0x136   : > { %5092 = vrcp.f32 %v1084_v60 }
 0x137   : > { %5094 = vrcp.f32 %v1090_v61 }
 0x13c   : > { %v5089_v62 = vpop.eup %5088 }
 0x13d   : > { %v5091_v63 = vpop.eup %5090  ;;  %v1097_v4 = vadd.f32 1.0, %v5089_v62 }
 0x13f   : > { %5096 = vrcp.f32 %v1097_v4 }
 0x140   : > { %v5093_v1 = vpop.eup %5092 }
 0x141   : > { %v5095_v2 = vpop.eup %5094  ;;  %v1101_v3 = vmul.f32 %v5093_v1, %v5091_v63 }
 0x142   : > { %v1100_v5 = vmul.f32 %v5095_v2, %v789_v0 }
 0x144   : > { %v1102_v6 = vadd.f32 %v1101_v3, %v1100_v5  ;;  %v1585_v5 = vld [vmem:[#allocation4 + $0x10] sm:$0xff] }
 0x146   : > { %5098 = vtanh.f32 %v1102_v6  ;;  %1105 = vst.msk [vmem:[#allocation8] sm:$0xff] %vm361_vm1, %v1102_v6 }
 0x149   : > { %v5097_v7 = vpop.eup %5096 }
 0x14d   : > { %v1109_v43 = vld [vmem:[#allocation8] sm:$0xff] }
 0x150   : > { %v5099_v8 = vpop.eup %5098 }
 0x151   : > { %v1104_v9 = vmul.f32 %v5099_v8, %v5097_v7 }
 0x153   : > { %1106 = vst.msk [vmem:[#allocation7] sm:$0xff] %vm361_vm1, %v1104_v9  ;;  %1107 = vst.msk [vmem:[#allocation6] sm:$0xff] %vm361_vm1, %v1104_v9 }
 0x15a   : > { %v1108_v10 = vld [vmem:[#allocation7] sm:$0xff] }
 0x15b   : > { %4428 = vmatmul.mubr.msk.f32.vlgmr.msra.gmra.mrb[12].mxu0 %vm361_vm1, %v1108_v10  ;;  %4439 = vmatmul.mubr.msk.f32.vlgmr.msra.gmra.mrb[12].mxu1 %vm361_vm1, %v1108_v10 }
 0x15c   : > { %4864 = vmatpush3.bf16.msra.mxu0 %v5492_v48  ;;  %4870 = vmatpush3.bf16.msra.mxu1 %v5497_v50 }
 0x15d   : > { %4865 = vmatprep.subr.bf16.mxu0 %v5260_v38  ;;  %4871 = vmatprep.subr.bf16.mxu1 %v5260_v38 }
 0x15e   : > { %4449 = vmatprep.mubr.msk.f32.mxu0 %vm5261_vm2, %v5262_v49  ;;  %4460 = vmatprep.mubr.msk.f32.mxu1 %vm5261_vm2, %v5262_v49 }
 0x160   : > { %4867 = vmatpush3.bf16.msra.mxu0 %v5518_v55  ;;  %4873 = vmatpush3.bf16.msra.mxu1 %v5522_v56 }
 0x161   : > { %4874 = vmatprep.subr.bf16.mxu0 %v5260_v38  ;;  %4880 = vmatprep.subr.bf16.mxu1 %v5260_v38 }
 0x163   : > { %4450 = vmatmul.mubr.msk.f32.vlgmr.msra.gmra.mrb[14].mxu0 %vm361_vm1, %v1108_v10  ;;  %4461 = vmatmul.mubr.msk.f32.vlgmr.msra.gmra.mrb[14].mxu1 %vm361_vm1, %v1108_v10 }
 0x164   : > { %4876 = vmatpush3.bf16.msra.mxu0 %v5445_v34  ;;  %4882 = vmatpush3.bf16.msra.mxu1 %v5448_v35 }
 0x165   : > { %4877 = vmatprep.subr.bf16.mxu0 %v5260_v38  ;;  %4883 = vmatprep.subr.bf16.mxu1 %v5260_v38 }
 0x166   : > { %4471 = vmatprep.mubr.msk.f32.mxu0 %vm5261_vm2, %v5262_v49  ;;  %4482 = vmatprep.mubr.msk.f32.mxu1 %vm5261_vm2, %v5262_v49 }
 0x168   : > { %4879 = vmatpush3.bf16.msra.mxu0 %v5468_v41  ;;  %4885 = vmatpush3.bf16.msra.mxu1 %v5472_v42 }
 0x169   : > { %4886 = vmatprep.subr.bf16.mxu0 %v5260_v38  ;;  %4892 = vmatprep.subr.bf16.mxu1 %v5260_v38 }
 0x22e   : > { %v1181_v12 = vpop.f32.mrb[12].mxu0  ;;  %v1254_v14 = vpop.f32.mrb[12].mxu1 }
 0x22f   : > { %v1185_v15 = vadd.f32 %v1181_v12, %v1111_v11  ;;  %v1258_v16 = vadd.f32 %v1254_v14, %v1187_v13  ;;  %v4429_v17 = vpop.f32.mrb[13].mxu0  ;;  %v4440_v18 = vpop.f32.mrb[13].mxu1 }
 0x231   : > { %v4004_v19 = vmul.f32 -1.442695, %v1185_v15  ;;  %v4005_v20 = vmul.f32 -1.442695, %v1258_v16 }
 0x233   : > { %5100 = vpow2.f32 %v4004_v19 }
 0x234   : > { %5102 = vpow2.f32 %v4005_v20 }
 0x236   : > { %v1327_v21 = vpop.f32.mrb[14].mxu0  ;;  %v1400_v23 = vpop.f32.mrb[14].mxu1 }
 0x237   : > { %v1404_v24 = vadd.f32 %v1400_v23, %v1333_v22  ;;  %v4451_v25 = vpop.f32.mrb[15].mxu0  ;;  %v4462_v26 = vpop.f32.mrb[15].mxu1  ;;  %v1331_v29 = vadd.f32 %v1327_v21, %v1260_v27  ;;  %v4026_v27 = vld [vmem:[%s5939_s4 + $0x20] sm:$0xff] }
 0x238   : > { %v2088_v25 = vld [vmem:[%s5939_s4 + $0x8] sm:$0xff] }
 0x239   : > { %v4006_v28 = vmul.f32 -1.442695, %v1404_v24  ;;  %v2087_v24 = vld [vmem:[%s5939_s4] sm:$0xff] }
 0x23b   : > { %5104 = vpow2.f32 %v4006_v28  ;;  %v4027_v28 = vld [vmem:[%s5939_s4 + $0x28] sm:$0xff] }
 0x23c   : > { %5106 = vtanh.f32 %v1331_v29  ;;  %v4922_v29 = vpack.c.bf16 %v2088_v25, %v2087_v24 }
 0x23d   : > { %v5101_v30 = vpop.eup %5100 }
 0x23e   : > { %v5103_v31 = vpop.eup %5102  ;;  %v1408_v32 = vadd.f32 1.0, %v5101_v30  ;;  %v4930_v30 = vpack.c.bf16 %v4027_v28, %v4026_v27 }
 0x23f   : > { %v1414_v33 = vadd.f32 1.0, %v5103_v31  ;;  %v2089_v31 = vld [vmem:[%s5939_s4 + $0x10] sm:$0xff] }
 0x240   : > { %5108 = vrcp.f32 %v1408_v32  ;;  %v4029_v32 = vld [vmem:[%s5939_s4 + $0x38] sm:$0xff] }
 0x241   : > { %5110 = vrcp.f32 %v1414_v33 }
 0x245   : > { %v5105_v36 = vpop.eup %5104 }
 0x246   : > { %v5107_v37 = vpop.eup %5106  ;;  %v1421_v45 = vadd.f32 1.0, %v5105_v36 }
 0x248   : > { %5112 = vrcp.f32 %v1421_v45  ;;  %v4047_v45 = vld [vmem:[%s5939_s4 + $0x68] sm:$0xff] }
 0x24a   : > { %v5109_v39 = vpop.eup %5108 }
 0x24b   : > { %v5111_v40 = vpop.eup %5110  ;;  %v1425_v44 = vmul.f32 %v5109_v39, %v5107_v37  ;;  %v5678_v37 = vld [vmem:[#allocation6] sm:$0xff] }
 0x24c   : > { %v1424_v46 = vmul.f32 %v5111_v40, %v1109_v43  ;;  %v4036_v39 = vld [vmem:[%s5939_s4 + $0x40] sm:$0xff]  ;;  %v4037_v40 = vld [vmem:[%s5939_s4 + $0x48] sm:$0xff] }
 0x24d   : > { %v4046_v43 = vld [vmem:[%s5939_s4 + $0x60] sm:$0xff] }
 0x24e   : > { %v1426_v47 = vadd.f32 %v1425_v44, %v1424_v46  ;;  %v4938_v44 = vpack.c.bf16 %v4037_v40, %v4036_v39  ;;  %v4038_v46 = vld [vmem:[%s5939_s4 + $0x50] sm:$0xff]  ;;  %v2510_v39 = vld [vmem:[#allocation12 + $0x20] sm:$0xff] }
 0x24f   : > { %v2511_v40 = vld [vmem:[#allocation12 + $0x28] sm:$0xff] }
 0x250   : > { %5114 = vtanh.f32 %v1426_v47  ;;  %1429 = vst.msk [vmem:[#allocation8] sm:$0xff] %vm361_vm1, %v1426_v47  ;;  %v4039_v47 = vld [vmem:[%s5939_s4 + $0x58] sm:$0xff] }
 0x252   : > { %v5113_v51 = vpop.eup %5112 }
 0x257   : > { %v1434_v16 = vld [vmem:[#allocation8] sm:$0xff] }
 0x25a   : > { %v5115_v52 = vpop.eup %5114 }
 0x25b   : > { %v1428_v53 = vmul.f32 %v5115_v52, %v5113_v51  ;;  %v4946_v51 = vpack.c.bf16 %v4047_v45, %v4046_v43  ;;  %v4942_v52 = vpack.c.bf16 %v4039_v47, %v4038_v46  ;;  %v5751_v45 = vpack.c.bf16 %v2511_v40, %v2510_v39  ;;  %v2507_v46 = vld [vmem:[#allocation12 + $0x10] sm:$0xff]  ;;  %v2508_v47 = vld [vmem:[#allocation12 + $0x18] sm:$0xff] }
 0x25d   : > { %1430 = vst.msk [vmem:[#allocation7] sm:$0xff] %vm361_vm1, %v1428_v53  ;;  %1432 = vst.msk [vmem:[#allocation6 + $0x8] sm:$0xff] %vm361_vm1, %v1428_v53  ;;  %v4048_v53 = vld [vmem:[%s5939_s4 + $0x70] sm:$0xff] }
 0x264   : > { %v1433_v54 = vld [vmem:[#allocation7] sm:$0xff] }
 0x265   : > { %4472 = vmatmul.mubr.msk.f32.vlgmr.msra.gmra.mrb[16].mxu0 %vm361_vm1, %v1433_v54  ;;  %4483 = vmatmul.mubr.msk.f32.vlgmr.msra.gmra.mrb[16].mxu1 %vm361_vm1, %v1433_v54 }
 0x266   : > { %4888 = vmatpush3.bf16.msra.mxu0 %v5492_v48  ;;  %4894 = vmatpush3.bf16.msra.mxu1 %v5497_v50 }
 0x267   : > { %4889 = vmatprep.subr.bf16.mxu0 %v5260_v38  ;;  %4895 = vmatprep.subr.bf16.mxu1 %v5260_v38 }
 0x268   : > { %4493 = vmatprep.mubr.msk.f32.mxu0 %vm5261_vm2, %v5262_v49  ;;  %4504 = vmatprep.mubr.msk.f32.mxu1 %vm5261_vm2, %v5262_v49 }
 0x26a   : > { %4891 = vmatpush3.bf16.msra.mxu0 %v5518_v55  ;;  %4897 = vmatpush3.bf16.msra.mxu1 %v5522_v56 }
 0x26b   : > { %4898 = vmatprep.subr.bf16.mxu0 %v5260_v38  ;;  %4904 = vmatprep.subr.bf16.mxu1 %v5260_v38 }
 0x26d   : > { %4494 = vmatmul.mubr.msk.f32.vlgmr.msra.gmra.mrb[18].mxu0 %vm361_vm1, %v1433_v54  ;;  %4505 = vmatmul.mubr.msk.f32.vlgmr.msra.gmra.mrb[18].mxu1 %vm361_vm1, %v1433_v54  ;;  %v4049_v54 = vld [vmem:[%s5939_s4 + $0x78] sm:$0xff] }
 0x26e   : > { %4900 = vmatpush3.bf16.msra.mxu0 %v5445_v34  ;;  %4906 = vmatpush3.bf16.msra.mxu1 %v5448_v35  ;;  %v1436_v34 = vld [vmem:[#allocation2 + $0x10] sm:$0xff] }
 0x26f   : > { %4901 = vmatprep.subr.bf16.mxu0 %v5260_v38  ;;  %4907 = vmatprep.subr.bf16.mxu1 %v5260_v38 }
 0x270   : > { %4515 = vmatprep.mubr.msk.f32.mxu0 %vm5261_vm2, %v5262_v49  ;;  %4526 = vmatprep.mubr.msk.f32.mxu1 %vm5261_vm2, %v5262_v49 }
 0x272   : > { %4903 = vmatpush3.bf16.msra.mxu0 %v5468_v41  ;;  %4909 = vmatpush3.bf16.msra.mxu1 %v5472_v42  ;;  %v1658_v41 = vld [vmem:[#allocation5 + $0x10] sm:$0xff] }
 0x273   : > { %4910 = vmatprep.subr.bf16.mxu0 %v5260_v38  ;;  %4916 = vmatprep.subr.bf16.mxu1 %v5260_v38 }
 0x338   : > { %v1506_v35 = vpop.f32.mrb[16].mxu0  ;;  %v1579_v58 = vpop.f32.mrb[16].mxu1 }
 0x339   : > { %v1510_v59 = vadd.f32 %v1506_v35, %v1436_v34  ;;  %v1583_v60 = vadd.f32 %v1579_v58, %v1512_v57  ;;  %v4473_v61 = vpop.f32.mrb[17].mxu0  ;;  %v4484_v62 = vpop.f32.mrb[17].mxu1  ;;  %v4950_v34 = vpack.c.bf16 %v4049_v54, %v4048_v53  ;;  %v1761_v35 = vld [vmem:[#allocation2 + $0x18] sm:$0xff]  ;;  %v5759_v53 = vpack.c.bf16 %v2508_v47, %v2507_v46  ;;  %v2515_v54 = vld [vmem:[#allocation12 + $0x40] sm:$0xff] }
 0x33a   : > { %v1837_v58 = vld [vmem:[#allocation3 + $0x18] sm:$0xff] }
 0x33b   : > { %v4011_v63 = vmul.f32 -1.442695, %v1510_v59  ;;  %v4012_v0 = vmul.f32 -1.442695, %v1583_v60 }
 0x33d   : > { %5116 = vpow2.f32 %v4011_v63 }
 0x33e   : > { %5118 = vpow2.f32 %v4012_v0 }
 0x340   : > { %v1652_v1 = vpop.f32.mrb[18].mxu0  ;;  %v1725_v2 = vpop.f32.mrb[18].mxu1 }
 0x341   : > { %v1729_v42 = vadd.f32 %v1725_v2, %v1658_v41  ;;  %v4495_v3 = vpop.f32.mrb[19].mxu0  ;;  %v4506_v4 = vpop.f32.mrb[19].mxu1  ;;  %v1656_v7 = vadd.f32 %v1652_v1, %v1585_v5  ;;  %v1983_v2 = vld [vmem:[#allocation5 + $0x18] sm:$0xff] }
 0x343   : > { %v4013_v6 = vmul.f32 -1.442695, %v1729_v42 }
 0x345   : > { %5120 = vpow2.f32 %v4013_v6  ;;  %v1910_v6 = vld [vmem:[#allocation4 + $0x18] sm:$0xff] }
 0x346   : > { %5122 = vtanh.f32 %v1656_v7 }
 0x347   : > { %v5117_v8 = vpop.eup %5116 }
 0x348   : > { %v5119_v9 = vpop.eup %5118  ;;  %v1733_v10 = vadd.f32 1.0, %v5117_v8 }
 0x349   : > { %v1739_v11 = vadd.f32 1.0, %v5119_v9  ;;  %v5725_v9 = vld [vmem:[%s5941_s6] ss:$0 sm:$0xff] }
 0x34a   : > { %5124 = vrcp.f32 %v1733_v10 }
 0x34b   : > { %5126 = vrcp.f32 %v1739_v11  ;;  %v5730_v11 = vld [vmem:[%s5941_s6 + $0x1] ss:$0 sm:$0xff] }
 0x34f   : > { %v5121_v12 = vpop.eup %5120 }
 0x350   : > { %v5123_v13 = vpop.eup %5122  ;;  %v1746_v18 = vadd.f32 1.0, %v5121_v12 }
 0x352   : > { %5128 = vrcp.f32 %v1746_v18 }
 0x354   : > { %v5125_v14 = vpop.eup %5124 }
 0x355   : > { %v5127_v15 = vpop.eup %5126  ;;  %v1750_v17 = vmul.f32 %v5125_v14, %v5123_v13 }
 0x356   : > { %v1749_v19 = vmul.f32 %v5127_v15, %v1434_v16 }
 0x358   : > { %v1751_v20 = vadd.f32 %v1750_v17, %v1749_v19 }
 0x35a   : > { %5130 = vtanh.f32 %v1751_v20  ;;  %1754 = vst.msk [vmem:[#allocation8] sm:$0xff] %vm361_vm1, %v1751_v20 }
 0x35c   : > { %v5129_v21 = vpop.eup %5128 }
 0x361   : > { %v1759_v27 = vld [vmem:[#allocation8] sm:$0xff] }
 0x364   : > { %v5131_v22 = vpop.eup %5130 }
 0x365   : > { %v1753_v23 = vmul.f32 %v5131_v22, %v5129_v21 }
 0x367   : > { %1755 = vst.msk [vmem:[#allocation7] sm:$0xff] %vm361_vm1, %v1753_v23  ;;  %1757 = vst.msk [vmem:[#allocation6 + $0x10] sm:$0xff] %vm361_vm1, %v1753_v23 }
 0x36e   : > { %v1758_v26 = vld [vmem:[#allocation7] sm:$0xff] }
 0x36f   : > { %4516 = vmatmul.mubr.msk.f32.vlgmr.msra.gmra.mrb[20].mxu0 %vm361_vm1, %v1758_v26  ;;  %4527 = vmatmul.mubr.msk.f32.vlgmr.msra.gmra.mrb[20].mxu1 %vm361_vm1, %v1758_v26 }
 0x370   : > { %4912 = vmatpush3.bf16.msra.mxu0 %v5492_v48  ;;  %4918 = vmatpush3.bf16.msra.mxu1 %v5497_v50  ;;  %v2090_v48 = vld [vmem:[%s5939_s4 + $0x18] sm:$0xff]  ;;  %v4028_v50 = vld [vmem:[%s5939_s4 + $0x30] sm:$0xff] }
 0x371   : > { %4913 = vmatprep.subr.bf16.mxu0 %v5260_v38  ;;  %4919 = vmatprep.subr.bf16.mxu1 %v5260_v38  ;;  %v4926_v33 = vpack.c.bf16 %v2090_v48, %v2089_v31  ;;  %v4934_v36 = vpack.c.bf16 %v4029_v32, %v4028_v50 }
 0x372   : > { %4537 = vmatprep.mubr.msk.f32.mxu0 %vm5261_vm2, %v5262_v49  ;;  %4548 = vmatprep.mubr.msk.f32.mxu1 %vm5261_vm2, %v5262_v49 }
 0x374   : > { %4915 = vmatpush3.bf16.msra.mxu0 %v5518_v55  ;;  %4921 = vmatpush3.bf16.msra.mxu1 %v5522_v56  ;;  %v5684_v55 = vld [vmem:[#allocation6 + $0x8] sm:$0xff]  ;;  %v5688_v56 = vld [vmem:[#allocation6 + $0x10] sm:$0xff] }
 0x375   : > { %4923 = vmatprep.subr.bf16.mxu0 %v4922_v29  ;;  %4931 = vmatprep.subr.bf16.mxu1 %v4930_v30 }
 0x377   : > { %4538 = vmatmul.mubr.msk.f32.vlgmr.msra.gmra.mrb[22].mxu0 %vm361_vm1, %v1758_v26  ;;  %4549 = vmatmul.mubr.msk.f32.vlgmr.msra.gmra.mrb[22].mxu1 %vm361_vm1, %v1758_v26 }
 0x378   : > { %4925 = vmatpush3.bf16.msra.mxu0 %v4922_v29  ;;  %4559 = vmatprep.mubr.msk.f32.mxu0 %vm361_vm1, %v5678_v37 }
 0x379   : > { %4933 = vmatpush3.bf16.msra.mxu1 %v4930_v30  ;;  %4573 = vmatprep.mubr.msk.f32.mxu1 %vm361_vm1, %v5678_v37 }
 0x37a   : > { %4927 = vmatprep.subr.bf16.mxu0 %v4926_v33  ;;  %4935 = vmatprep.subr.bf16.mxu1 %v4934_v36 }
 0x37c   : > { %4929 = vmatpush3.bf16.msra.mxu0 %v4926_v33  ;;  %v2505_v33 = vld [vmem:[#allocation12] sm:$0xff] }
 0x37d   : > { %4937 = vmatpush3.bf16.msra.mxu1 %v4934_v36  ;;  %4939 = vmatprep.subr.bf16.mxu0 %v4938_v44  ;;  %v2506_v36 = vld [vmem:[#allocation12 + $0x8] sm:$0xff] }
 0x37e   : > { %4947 = vmatprep.subr.bf16.mxu1 %v4946_v51 }
 0x37f   : > { %4560 = vmatmul.mubr.msk.f32.vlgmr.msra.gmra.mrb[24].mxu0 %vm361_vm1, %v5684_v55 }
 0x380   : > { %4574 = vmatmul.mubr.msk.f32.vlgmr.msra.gmra.mrb[24].mxu1 %vm361_vm1, %v5684_v55  ;;  %4562 = vmatprep.mubr.msk.f32.mxu0 %vm361_vm1, %v5688_v56 }
 0x381   : > { %4576 = vmatprep.mubr.msk.f32.mxu1 %vm361_vm1, %v5688_v56  ;;  %4941 = vmatpush3.bf16.msra.mxu0 %v4938_v44  ;;  %v5749_v44 = vpack.c.bf16 %v2506_v36, %v2505_v33 }
 0x382   : > { %4949 = vmatpush3.bf16.msra.mxu1 %v4946_v51  ;;  %4943 = vmatprep.subr.bf16.mxu0 %v4942_v52  ;;  %v2512_v51 = vld [vmem:[#allocation12 + $0x30] sm:$0xff] }
 0x383   : > { %4951 = vmatprep.subr.bf16.mxu1 %v4950_v34 }
 0x385   : > { %4945 = vmatpush3.bf16.msra.mxu0 %v4942_v52  ;;  %v2513_v52 = vld [vmem:[#allocation12 + $0x38] sm:$0xff] }
 0x386   : > { %4953 = vmatpush3.bf16.msra.mxu1 %v4950_v34  ;;  %4954 = vmatprep.subr.bf16.mxu0 %v5260_v38  ;;  %v2516_v34 = vld [vmem:[#allocation12 + $0x48] sm:$0xff] }
 0x387   : > { %4960 = vmatprep.subr.bf16.mxu1 %v5260_v38 }
 0x442   : > { %v1831_v57 = vpop.f32.mrb[20].mxu0  ;;  %v1904_v59 = vpop.f32.mrb[20].mxu1 }
 0x443   : > { %v1835_v60 = vadd.f32 %v1831_v57, %v1761_v35  ;;  %v1908_v61 = vadd.f32 %v1904_v59, %v1837_v58  ;;  %v4517_v62 = vpop.f32.mrb[21].mxu0  ;;  %v4528_v63 = vpop.f32.mrb[21].mxu1  ;;  %v2520_v35 = vld [vmem:[#allocation12 + $0x60] sm:$0xff]  ;;  %v2521_v57 = vld [vmem:[#allocation12 + $0x68] sm:$0xff]  ;;  %v5773_v58 = vpack.c.bf16 %v2516_v34, %v2515_v54 }
 0x444   : > { %v5775_v59 = vpack.c.bf16 %v2521_v57, %v2520_v35  ;;  %v2523_v62 = vld [vmem:[#allocation12 + $0x78] sm:$0xff] }
 0x445   : > { %v4018_v0 = vmul.f32 -1.442695, %v1835_v60  ;;  %v4019_v1 = vmul.f32 -1.442695, %v1908_v61  ;;  %v2518_v60 = vld [vmem:[#allocation12 + $0x58] sm:$0xff]  ;;  %v2522_v61 = vld [vmem:[#allocation12 + $0x70] sm:$0xff] }
 0x447   : > { %5132 = vpow2.f32 %v4018_v0  ;;  %v5789_v0 = vpack.c.bf16 %v2523_v62, %v2522_v61 }
 0x448   : > { %5134 = vpow2.f32 %v4019_v1 }
 0x44a   : > { %v1977_v41 = vpop.f32.mrb[22].mxu0  ;;  %v2050_v42 = vpop.f32.mrb[22].mxu1 }
 0x44b   : > { %v2054_v3 = vadd.f32 %v2050_v42, %v1983_v2  ;;  %v4539_v4 = vpop.f32.mrb[23].mxu0  ;;  %v4550_v5 = vpop.f32.mrb[23].mxu1  ;;  %v1981_v8 = vadd.f32 %v1977_v41, %v1910_v6 }
 0x44d   : > { %v4020_v7 = vmul.f32 -1.442695, %v2054_v3 }
 0x44f   : > { %5136 = vpow2.f32 %v4020_v7  ;;  %v4041_v7 = vld [vmem:[%s5941_s6 + $0x2] ss:$0 sm:$0xff] }
 0x450   : > { %5138 = vtanh.f32 %v1981_v8  ;;  %v4051_v8 = vld [vmem:[%s5941_s6 + $0x3] ss:$0 sm:$0xff] }
 0x451   : > { %v5133_v10 = vpop.eup %5132 }
 0x452   : > { %v5135_v12 = vpop.eup %5134  ;;  %v2058_v13 = vadd.f32 1.0, %v5133_v10  ;;  %v4561_v14 = vpop.f32.mrb[24].mxu0 }
 0x453   : > { %v2064_v15 = vadd.f32 1.0, %v5135_v12  ;;  %v2182_v16 = vadd.f32 %v4561_v14, %v5725_v9  ;;  %v4575_v17 = vpop.f32.mrb[24].mxu1  ;;  %v2176_v18 = vpop.f32.mrb[25].mxu0 }
 0x454   : > { %5140 = vrcp.f32 %v2058_v13  ;;  %v2284_v19 = vadd.f32 %v4575_v17, %v5730_v11  ;;  %v2177_v20 = vadd.f32 %v5725_v9, %v2176_v18  ;;  %v2278_v21 = vpop.f32.mrb[25].mxu1 }
 0x455   : > { %5142 = vrcp.f32 %v2064_v15  ;;  %2196 = vst.msk [vmem:[#allocation2 + $0x8] sm:$0xff] %vm361_vm1, %v2182_v16  ;;  %v2279_v22 = vadd.f32 %v5730_v11, %v2278_v21 }
 0x456   : > { %2298 = vst.msk [vmem:[#allocation3 + $0x8] sm:$0xff] %vm361_vm1, %v2284_v19  ;;  %2195 = vst.msk [vmem:[#allocation2] sm:$0xff] %vm361_vm1, %v2177_v20 }
 0x457   : > { %2297 = vst.msk [vmem:[#allocation3] sm:$0xff] %vm361_vm1, %v2279_v22 }
 0x459   : > { %v5137_v23 = vpop.eup %5136 }
 0x45a   : > { %v5139_v24 = vpop.eup %5138  ;;  %v2071_v29 = vadd.f32 1.0, %v5137_v23 }
 0x45c   : > { %5144 = vrcp.f32 %v2071_v29 }
 0x45e   : > { %v5141_v25 = vpop.eup %5140 }
 0x45f   : > { %v5143_v26 = vpop.eup %5142  ;;  %v2075_v28 = vmul.f32 %v5141_v25, %v5139_v24  ;;  %v2526_v25 = vld [vmem:[#allocation2] sm:$0xff] }
 0x460   : > { %v2074_v30 = vmul.f32 %v5143_v26, %v1759_v27  ;;  %v2601_v27 = vld [vmem:[#allocation3] sm:$0xff] }
 0x462   : > { %v2076_v31 = vadd.f32 %v2075_v28, %v2074_v30 }
 0x464   : > { %5146 = vtanh.f32 %v2076_v31  ;;  %2079 = vst.msk [vmem:[#allocation8] sm:$0xff] %vm361_vm1, %v2076_v31 }
 0x466   : > { %v5145_v48 = vpop.eup %5144 }
 0x46e   : > { %v5147_v50 = vpop.eup %5146 }
 0x46f   : > { %v2078_v32 = vmul.f32 %v5147_v50, %v5145_v48 }
 0x471   : > { %2080 = vst.msk [vmem:[#allocation7] sm:$0xff] %vm361_vm1, %v2078_v32  ;;  %2082 = vst.msk [vmem:[#allocation6 + $0x18] sm:$0xff] %vm361_vm1, %v2078_v32 }
 0x478   : > { %v2086_v43 = vld [vmem:[#allocation6 + $0x18] sm:$0xff] }
 0x479   : > { %4563 = vmatmul.mubr.msk.f32.gmra.mrb[26].mxu0 %vm361_vm1, %v2086_v43  ;;  %4577 = vmatmul.mubr.msk.f32.gmra.mrb[26].mxu1 %vm361_vm1, %v2086_v43 }
 0x47a   : > { %4587 = vmatprep.mubr.msk.f32.mxu0 %vm361_vm1, %v5678_v37  ;;  %4601 = vmatprep.mubr.msk.f32.mxu1 %vm361_vm1, %v5678_v37  ;;  %v5761_v37 = vpack.c.bf16 %v2513_v52, %v2512_v51 }
 0x47d   : > { %4588 = vmatmul.mubr.msk.f32.vlgmr.msra.gmra.mrb[28].mxu0 %vm361_vm1, %v5684_v55  ;;  %4602 = vmatmul.mubr.msk.f32.vlgmr.msra.gmra.mrb[28].mxu1 %vm361_vm1, %v5684_v55  ;;  %v2524_v55 = vld [vmem:[#allocation9] sm:$0xff] }
 0x47e   : > { %4956 = vmatpush3.bf16.msra.mxu0 %v5749_v44  ;;  %4962 = vmatpush3.bf16.msra.mxu1 %v5751_v45 }
 0x47f   : > { %4590 = vmatprep.mubr.msk.f32.mxu0 %vm361_vm1, %v5688_v56  ;;  %4604 = vmatprep.mubr.msk.f32.mxu1 %vm361_vm1, %v5688_v56  ;;  %v2517_v56 = vld [vmem:[#allocation12 + $0x50] sm:$0xff] }
 0x480   : > { %4957 = vmatprep.subr.bf16.mxu0 %v5260_v38  ;;  %4963 = vmatprep.subr.bf16.mxu1 %v5260_v38  ;;  %v5787_v63 = vpack.c.bf16 %v2518_v60, %v2517_v56  ;;  %v2525_v60 = vld [vmem:[#allocation10] sm:$0xff] }
 0x481   : > { %4591 = vmatmul.mubr.msk.f32.gmra.mrb[30].mxu0 %vm361_vm1, %v2086_v43  ;;  %4605 = vmatmul.mubr.msk.f32.gmra.mrb[30].mxu1 %vm361_vm1, %v2086_v43 }
 0x482   : > { %4959 = vmatpush3.bf16.msra.mxu0 %v5759_v53  ;;  %4965 = vmatpush3.bf16.msra.mxu1 %v5761_v37 }
 0x483   : > { %4615 = vmatprep.mubr.msk.f32.mxu0 %vm5261_vm2, %v5262_v49  ;;  %4626 = vmatprep.mubr.msk.f32.mxu1 %vm5261_vm2, %v5262_v49 }
 0x484   : > { %4966 = vmatprep.subr.bf16.mxu0 %v5260_v38  ;;  %4972 = vmatprep.subr.bf16.mxu1 %v5260_v38 }
 0x485   : > { %4616 = vmatmul.mubr.msk.f32.vlgmr.msra.gmra.mrb[32].mxu0 %vm361_vm1, %v2524_v55  ;;  %4627 = vmatmul.mubr.msk.f32.vlgmr.msra.gmra.mrb[32].mxu1 %vm361_vm1, %v2524_v55 }
 0x486   : > { %4968 = vmatpush3.bf16.msra.mxu0 %v5773_v58  ;;  %4974 = vmatpush3.bf16.msra.mxu1 %v5775_v59 }
 0x487   : > { %4969 = vmatprep.subr.bf16.mxu0 %v5260_v38  ;;  %4975 = vmatprep.subr.bf16.mxu1 %v5260_v38 }
 0x488   : > { %4637 = vmatprep.mubr.msk.f32.mxu0 %vm5261_vm2, %v5262_v49  ;;  %4648 = vmatprep.mubr.msk.f32.mxu1 %vm5261_vm2, %v5262_v49 }
 0x48a   : > { %4971 = vmatpush3.bf16.msra.mxu0 %v5787_v63  ;;  %4977 = vmatpush3.bf16.msra.mxu1 %v5789_v0 }
 0x48b   : > { %4978 = vmatprep.subr.bf16.mxu0 %v5260_v38  ;;  %4984 = vmatprep.subr.bf16.mxu1 %v5260_v38 }
 0x48d   : > { %4638 = vmatmul.mubr.msk.f32.vlgmr.msra.gmra.mrb[34].mxu0 %vm361_vm1, %v2524_v55  ;;  %4649 = vmatmul.mubr.msk.f32.vlgmr.msra.gmra.mrb[34].mxu1 %vm361_vm1, %v2524_v55 }
 0x48e   : > { %4980 = vmatpush3.bf16.msra.mxu0 %v5749_v44  ;;  %4986 = vmatpush3.bf16.msra.mxu1 %v5751_v45 }
 0x48f   : > { %4981 = vmatprep.subr.bf16.mxu0 %v5260_v38  ;;  %4987 = vmatprep.subr.bf16.mxu1 %v5260_v38 }
 0x490   : > { %4659 = vmatprep.mubr.msk.f32.mxu0 %vm5261_vm2, %v5262_v49  ;;  %4670 = vmatprep.mubr.msk.f32.mxu1 %vm5261_vm2, %v5262_v49 }
 0x492   : > { %4983 = vmatpush3.bf16.msra.mxu0 %v5759_v53  ;;  %4989 = vmatpush3.bf16.msra.mxu1 %v5761_v37 }
 0x493   : > { %4990 = vmatprep.subr.bf16.mxu0 %v5260_v38  ;;  %4996 = vmatprep.subr.bf16.mxu1 %v5260_v38 }
 0x54c   : > { %v4564_v1 = vpop.f32.mrb[26].mxu0  ;;  %v4578_v41 = vpop.f32.mrb[26].mxu1 }
 0x54d   : > { %v2192_v2 = vadd.f32 %v4564_v1, %v5725_v9  ;;  %v2294_v42 = vadd.f32 %v4578_v41, %v5730_v11  ;;  %v2186_v3 = vpop.f32.mrb[27].mxu0  ;;  %v2288_v4 = vpop.f32.mrb[27].mxu1 }
 0x54e   : > { %v2187_v5 = vadd.f32 %v5725_v9, %v2186_v3  ;;  %v2289_v6 = vadd.f32 %v5730_v11, %v2288_v4 }
 0x54f   : > { %2198 = vst.msk [vmem:[#allocation2 + $0x18] sm:$0xff] %vm361_vm1, %v2192_v2  ;;  %2300 = vst.msk [vmem:[#allocation3 + $0x18] sm:$0xff] %vm361_vm1, %v2294_v42 }
 0x550   : > { %2197 = vst.msk [vmem:[#allocation2 + $0x10] sm:$0xff] %vm361_vm1, %v2187_v5  ;;  %2299 = vst.msk [vmem:[#allocation3 + $0x10] sm:$0xff] %vm361_vm1, %v2289_v6  ;;  %v4589_v10 = vpop.f32.mrb[28].mxu0  ;;  %v4603_v9 = vpop.f32.mrb[28].mxu1 }
 0x551   : > { %v2386_v12 = vadd.f32 %v4589_v10, %v4041_v7  ;;  %v2488_v11 = vadd.f32 %v4603_v9, %v4051_v8  ;;  %v2380_v13 = vpop.f32.mrb[29].mxu0  ;;  %v2482_v14 = vpop.f32.mrb[29].mxu1  ;;  %v2920_v10 = vld [vmem:[#allocation3 + $0x8] sm:$0xff] }
 0x552   : > { %v2381_v15 = vadd.f32 %v4041_v7, %v2380_v13  ;;  %v2483_v16 = vadd.f32 %v4051_v8, %v2482_v14 }
 0x553   : > { %2400 = vst.msk [vmem:[#allocation4 + $0x8] sm:$0xff] %vm361_vm1, %v2386_v12  ;;  %2502 = vst.msk [vmem:[#allocation5 + $0x8] sm:$0xff] %vm361_vm1, %v2488_v11 }
 0x554   : > { %2399 = vst.msk [vmem:[#allocation4] sm:$0xff] %vm361_vm1, %v2381_v15  ;;  %2501 = vst.msk [vmem:[#allocation5] sm:$0xff] %vm361_vm1, %v2483_v16  ;;  %v4592_v17 = vpop.f32.mrb[30].mxu0  ;;  %v4606_v18 = vpop.f32.mrb[30].mxu1 }
 0x555   : > { %v2396_v19 = vadd.f32 %v4592_v17, %v4041_v7  ;;  %v2498_v20 = vadd.f32 %v4606_v18, %v4051_v8  ;;  %v2390_v21 = vpop.f32.mrb[31].mxu0  ;;  %v2492_v22 = vpop.f32.mrb[31].mxu1 }
 0x556   : > { %v2391_v23 = vadd.f32 %v4041_v7, %v2390_v21  ;;  %v2493_v24 = vadd.f32 %v4051_v8, %v2492_v22  ;;  %v2845_v7 = vld [vmem:[#allocation2 + $0x8] sm:$0xff] }
 0x557   : > { %2402 = vst.msk [vmem:[#allocation4 + $0x18] sm:$0xff] %vm361_vm1, %v2396_v19  ;;  %2504 = vst.msk [vmem:[#allocation5 + $0x18] sm:$0xff] %vm361_vm1, %v2498_v20 }
 0x558   : > { %2401 = vst.msk [vmem:[#allocation4 + $0x10] sm:$0xff] %vm361_vm1, %v2391_v23  ;;  %2503 = vst.msk [vmem:[#allocation5 + $0x10] sm:$0xff] %vm361_vm1, %v2493_v24  ;;  %v2596_v26 = vpop.f32.mrb[32].mxu0  ;;  %v2668_v28 = vpop.f32.mrb[32].mxu1 }
 0x559   : > { %v2600_v29 = vadd.f32 %v2596_v26, %v2526_v25  ;;  %v2672_v30 = vadd.f32 %v2668_v28, %v2601_v27  ;;  %v4617_v31 = vpop.f32.mrb[33].mxu0  ;;  %v4628_v48 = vpop.f32.mrb[33].mxu1 }
 0x55a   : > { %v3064_v18 = vld [vmem:[#allocation5 + $0x8] sm:$0xff] }
 0x55b   : > { %v4060_v50 = vmul.f32 -1.442695, %v2600_v29  ;;  %v4061_v32 = vmul.f32 -1.442695, %v2672_v30  ;;  %v2745_v36 = vld [vmem:[#allocation5] sm:$0xff]  ;;  %v2992_v23 = vld [vmem:[#allocation4 + $0x8] sm:$0xff] }
 0x55c   : > { %v2673_v47 = vld [vmem:[#allocation4] sm:$0xff] }
 0x55d   : > { %5148 = vpow2.f32 %v4060_v50 }
 0x55e   : > { %5150 = vpow2.f32 %v4061_v32 }
 0x560   : > { %v2740_v33 = vpop.f32.mrb[34].mxu0  ;;  %v2812_v39 = vpop.f32.mrb[34].mxu1 }
 0x561   : > { %v2816_v40 = vadd.f32 %v2812_v39, %v2745_v36  ;;  %v4639_v43 = vpop.f32.mrb[35].mxu0  ;;  %v4650_v46 = vpop.f32.mrb[35].mxu1  ;;  %v2744_v52 = vadd.f32 %v2740_v33, %v2673_v47 }
 0x563   : > { %v4062_v51 = vmul.f32 -1.442695, %v2816_v40 }
 0x565   : > { %5152 = vpow2.f32 %v4062_v51 }
 0x566   : > { %5154 = vtanh.f32 %v2744_v52  ;;  %v3239_v52 = vld [vmem:[#allocation3 + $0x10] sm:$0xff] }
 0x567   : > { %v5149_v54 = vpop.eup %5148 }
 0x568   : > { %v5151_v34 = vpop.eup %5150  ;;  %v2820_v35 = vadd.f32 1.0, %v5149_v54 }
 0x569   : > { %v2826_v57 = vadd.f32 1.0, %v5151_v34 }
 0x56a   : > { %5156 = vrcp.f32 %v2820_v35 }
 0x56b   : > { %5158 = vrcp.f32 %v2826_v57 }
 0x56f   : > { %v5153_v55 = vpop.eup %5152 }
 0x570   : > { %v5155_v56 = vpop.eup %5154  ;;  %v2833_v41 = vadd.f32 1.0, %v5153_v55 }
 0x572   : > { %5160 = vrcp.f32 %v2833_v41 }
 0x574   : > { %v5157_v61 = vpop.eup %5156 }
 0x575   : > { %v5159_v62 = vpop.eup %5158  ;;  %v2837_v1 = vmul.f32 %v5157_v61, %v5155_v56 }
 0x576   : > { %v2836_v2 = vmul.f32 %v5159_v62, %v2525_v60 }
 0x578   : > { %v2838_v42 = vadd.f32 %v2837_v1, %v2836_v2  ;;  %v3311_v2 = vld [vmem:[#allocation4 + $0x10] sm:$0xff] }
 0x57a   : > { %5162 = vtanh.f32 %v2838_v42  ;;  %2841 = vst.msk [vmem:[#allocation10] sm:$0xff] %vm361_vm1, %v2838_v42 }
 0x57c   : > { %v5161_v3 = vpop.eup %5160 }
 0x581   : > { %v2844_v32 = vld [vmem:[#allocation10] sm:$0xff] }
 0x584   : > { %v5163_v4 = vpop.eup %5162 }
 0x585   : > { %v2840_v5 = vmul.f32 %v5163_v4, %v5161_v3 }
 0x587   : > { %2842 = vst.msk [vmem:[#allocation9] sm:$0xff] %vm361_vm1, %v2840_v5 }
 0x58e   : > { %v2843_v6 = vld [vmem:[#allocation9] sm:$0xff] }
 0x58f   : > { %4660 = vmatmul.mubr.msk.f32.vlgmr.msra.gmra.mrb[36].mxu0 %vm361_vm1, %v2843_v6  ;;  %4671 = vmatmul.mubr.msk.f32.vlgmr.msra.gmra.mrb[36].mxu1 %vm361_vm1, %v2843_v6 }
 0x590   : > { %4992 = vmatpush3.bf16.msra.mxu0 %v5773_v58  ;;  %4998 = vmatpush3.bf16.msra.mxu1 %v5775_v59 }
 0x591   : > { %4993 = vmatprep.subr.bf16.mxu0 %v5260_v38  ;;  %4999 = vmatprep.subr.bf16.mxu1 %v5260_v38 }
 0x592   : > { %4681 = vmatprep.mubr.msk.f32.mxu0 %vm5261_vm2, %v5262_v49  ;;  %4692 = vmatprep.mubr.msk.f32.mxu1 %vm5261_vm2, %v5262_v49 }
 0x594   : > { %4995 = vmatpush3.bf16.msra.mxu0 %v5787_v63  ;;  %5001 = vmatpush3.bf16.msra.mxu1 %v5789_v0 }
 0x595   : > { %5002 = vmatprep.subr.bf16.mxu0 %v5260_v38  ;;  %5008 = vmatprep.subr.bf16.mxu1 %v5260_v38 }
 0x597   : > { %4682 = vmatmul.mubr.msk.f32.vlgmr.msra.gmra.mrb[38].mxu0 %vm361_vm1, %v2843_v6  ;;  %4693 = vmatmul.mubr.msk.f32.vlgmr.msra.gmra.mrb[38].mxu1 %vm361_vm1, %v2843_v6 }
 0x598   : > { %5004 = vmatpush3.bf16.msra.mxu0 %v5749_v44  ;;  %5010 = vmatpush3.bf16.msra.mxu1 %v5751_v45 }
 0x599   : > { %5005 = vmatprep.subr.bf16.mxu0 %v5260_v38  ;;  %5011 = vmatprep.subr.bf16.mxu1 %v5260_v38 }
 0x59a   : > { %4703 = vmatprep.mubr.msk.f32.mxu0 %vm5261_vm2, %v5262_v49  ;;  %4714 = vmatprep.mubr.msk.f32.mxu1 %vm5261_vm2, %v5262_v49 }
 0x59c   : > { %5007 = vmatpush3.bf16.msra.mxu0 %v5759_v53  ;;  %5013 = vmatpush3.bf16.msra.mxu1 %v5761_v37 }
 0x59d   : > { %5014 = vmatprep.subr.bf16.mxu0 %v5260_v38  ;;  %5020 = vmatprep.subr.bf16.mxu1 %v5260_v38 }
 0x662   : > { %v2915_v8 = vpop.f32.mrb[36].mxu0  ;;  %v2987_v9 = vpop.f32.mrb[36].mxu1 }
 0x663   : > { %v2919_v12 = vadd.f32 %v2915_v8, %v2845_v7  ;;  %v2991_v11 = vadd.f32 %v2987_v9, %v2920_v10  ;;  %v4661_v13 = vpop.f32.mrb[37].mxu0  ;;  %v4672_v14 = vpop.f32.mrb[37].mxu1 }
 0x665   : > { %v4067_v15 = vmul.f32 -1.442695, %v2919_v12  ;;  %v4068_v16 = vmul.f32 -1.442695, %v2991_v11 }
 0x667   : > { %5164 = vpow2.f32 %v4067_v15 }
 0x668   : > { %5166 = vpow2.f32 %v4068_v16 }
 0x66a   : > { %v3059_v17 = vpop.f32.mrb[38].mxu0  ;;  %v3131_v19 = vpop.f32.mrb[38].mxu1 }
 0x66b   : > { %v3135_v20 = vadd.f32 %v3131_v19, %v3064_v18  ;;  %v4683_v21 = vpop.f32.mrb[39].mxu0  ;;  %v4694_v22 = vpop.f32.mrb[39].mxu1  ;;  %v3063_v25 = vadd.f32 %v3059_v17, %v2992_v23 }
 0x66c   : > { %v3558_v21 = vld [vmem:[#allocation3 + $0x18] sm:$0xff] }
 0x66d   : > { %v4069_v24 = vmul.f32 -1.442695, %v3135_v20 }
 0x66f   : > { %5168 = vpow2.f32 %v4069_v24 }
 0x670   : > { %5170 = vtanh.f32 %v3063_v25 }
 0x671   : > { %v5165_v26 = vpop.eup %5164 }
 0x672   : > { %v5167_v27 = vpop.eup %5166  ;;  %v3139_v28 = vadd.f32 1.0, %v5165_v26 }
 0x673   : > { %v3145_v29 = vadd.f32 1.0, %v5167_v27 }
 0x674   : > { %5172 = vrcp.f32 %v3139_v28 }
 0x675   : > { %5174 = vrcp.f32 %v3145_v29 }
 0x679   : > { %v5169_v30 = vpop.eup %5168 }
 0x67a   : > { %v5171_v31 = vpop.eup %5170  ;;  %v3152_v36 = vadd.f32 1.0, %v5169_v30 }
 0x67c   : > { %5176 = vrcp.f32 %v3152_v36 }
 0x67e   : > { %v5173_v48 = vpop.eup %5172 }
 0x67f   : > { %v5175_v50 = vpop.eup %5174  ;;  %v3156_v33 = vmul.f32 %v5173_v48, %v5171_v31  ;;  %v3630_v31 = vld [vmem:[#allocation4 + $0x18] sm:$0xff] }
 0x680   : > { %v3155_v39 = vmul.f32 %v5175_v50, %v2844_v32 }
 0x682   : > { %v3157_v40 = vadd.f32 %v3156_v33, %v3155_v39 }
 0x684   : > { %5178 = vtanh.f32 %v3157_v40  ;;  %3160 = vst.msk [vmem:[#allocation10] sm:$0xff] %vm361_vm1, %v3157_v40 }
 0x686   : > { %v5177_v43 = vpop.eup %5176 }
 0x68b   : > { %v3163_v11 = vld [vmem:[#allocation10] sm:$0xff] }
 0x68e   : > { %v5179_v46 = vpop.eup %5178 }
 0x68f   : > { %v3159_v47 = vmul.f32 %v5179_v46, %v5177_v43 }
 0x691   : > { %3161 = vst.msk [vmem:[#allocation9] sm:$0xff] %vm361_vm1, %v3159_v47 }
 0x698   : > { %v3162_v51 = vld [vmem:[#allocation9] sm:$0xff] }
 0x699   : > { %4704 = vmatmul.mubr.msk.f32.vlgmr.msra.gmra.mrb[40].mxu0 %vm361_vm1, %v3162_v51  ;;  %4715 = vmatmul.mubr.msk.f32.vlgmr.msra.gmra.mrb[40].mxu1 %vm361_vm1, %v3162_v51 }
 0x69a   : > { %5016 = vmatpush3.bf16.msra.mxu0 %v5773_v58  ;;  %5022 = vmatpush3.bf16.msra.mxu1 %v5775_v59 }
 0x69b   : > { %5017 = vmatprep.subr.bf16.mxu0 %v5260_v38  ;;  %5023 = vmatprep.subr.bf16.mxu1 %v5260_v38 }
 0x69c   : > { %4725 = vmatprep.mubr.msk.f32.mxu0 %vm5261_vm2, %v5262_v49  ;;  %4736 = vmatprep.mubr.msk.f32.mxu1 %vm5261_vm2, %v5262_v49 }
 0x69e   : > { %5019 = vmatpush3.bf16.msra.mxu0 %v5787_v63  ;;  %5025 = vmatpush3.bf16.msra.mxu1 %v5789_v0 }
 0x69f   : > { %5026 = vmatprep.subr.bf16.mxu0 %v5260_v38  ;;  %5032 = vmatprep.subr.bf16.mxu1 %v5260_v38 }
 0x6a1   : > { %4726 = vmatmul.mubr.msk.f32.vlgmr.msra.gmra.mrb[42].mxu0 %vm361_vm1, %v3162_v51  ;;  %4737 = vmatmul.mubr.msk.f32.vlgmr.msra.gmra.mrb[42].mxu1 %vm361_vm1, %v3162_v51 }
 0x6a2   : > { %5028 = vmatpush3.bf16.msra.mxu0 %v5749_v44  ;;  %5034 = vmatpush3.bf16.msra.mxu1 %v5751_v45  ;;  %v3164_v44 = vld [vmem:[#allocation2 + $0x10] sm:$0xff] }
 0x6a3   : > { %5029 = vmatprep.subr.bf16.mxu0 %v5260_v38  ;;  %5035 = vmatprep.subr.bf16.mxu1 %v5260_v38 }
 0x6a4   : > { %4747 = vmatprep.mubr.msk.f32.mxu0 %vm5261_vm2, %v5262_v49  ;;  %4758 = vmatprep.mubr.msk.f32.mxu1 %vm5261_vm2, %v5262_v49 }
 0x6a6   : > { %5031 = vmatpush3.bf16.msra.mxu0 %v5759_v53  ;;  %5037 = vmatpush3.bf16.msra.mxu1 %v5761_v37  ;;  %v3383_v53 = vld [vmem:[#allocation5 + $0x10] sm:$0xff] }
 0x6a7   : > { %5038 = vmatprep.subr.bf16.mxu0 %v5260_v38  ;;  %5044 = vmatprep.subr.bf16.mxu1 %v5260_v38 }
 0x76c   : > { %v3234_v45 = vpop.f32.mrb[40].mxu0  ;;  %v3306_v54 = vpop.f32.mrb[40].mxu1 }
 0x76d   : > { %v3238_v34 = vadd.f32 %v3234_v45, %v3164_v44  ;;  %v3310_v35 = vadd.f32 %v3306_v54, %v3239_v52  ;;  %v4705_v57 = vpop.f32.mrb[41].mxu0  ;;  %v4716_v55 = vpop.f32.mrb[41].mxu1 }
 0x76e   : > { %v3805_v55 = vld [vmem:[%s5942_s7] sm:$0xff] (!%p4084_p4) }
 0x76f   : > { %v4074_v56 = vmul.f32 -1.442695, %v3238_v34  ;;  %v4075_v60 = vmul.f32 -1.442695, %v3310_v35 }
 0x771   : > { %5180 = vpow2.f32 %v4074_v56  ;;  %v3806_v56 = vld [vmem:[%s5942_s7 + $0x8] sm:$0xff] (!%p4084_p4) }
 0x772   : > { %5182 = vpow2.f32 %v4075_v60  ;;  %v3807_v60 = vld [vmem:[%s5942_s7 + $0x10] sm:$0xff] (!%p4084_p4) }
 0x774   : > { %v3378_v61 = vpop.f32.mrb[42].mxu0  ;;  %v3450_v62 = vpop.f32.mrb[42].mxu1 }
 0x775   : > { %v3454_v37 = vadd.f32 %v3450_v62, %v3383_v53  ;;  %v4727_v1 = vpop.f32.mrb[43].mxu0  ;;  %v4738_v41 = vpop.f32.mrb[43].mxu1  ;;  %v3382_v3 = vadd.f32 %v3378_v61, %v3311_v2  ;;  %v5263_v61 = vmov (!%p4084_p4), 0.0|0.0   ;;  %v5051_v53 = vpack.c.bf16 (!%p4084_p4), %v3806_v56, %v3805_v55  ;;  %v3808_v62 = vld [vmem:[%s5942_s7 + $0x18] sm:$0xff] (!%p4084_p4)  ;;  %v4085_v2 = vld [vmem:[#allocation11] ss:$0 sm:$0xff] (!%p4084_p4) }
 0x776   : > { %v5054_v1 = vpack.c.bf16 (!%p4084_p4), %v3808_v62, %v3807_v60 }
 0x777   : > { %v4076_v42 = vmul.f32 -1.442695, %v3454_v37  ;;  %v5265_v37 = vmov (!%p4084_p4), 0.0  }
 0x779   : > { %5184 = vpow2.f32 %v4076_v42 }
 0x77a   : > { %5186 = vtanh.f32 %v3382_v3 }
 0x77b   : > { %v5181_v4 = vpop.eup %5180 }
 0x77c   : > { %v5183_v5 = vpop.eup %5182  ;;  %v3458_v6 = vadd.f32 1.0, %v5181_v4 }
 0x77d   : > { %v3464_v7 = vadd.f32 1.0, %v5183_v5 }
 0x77e   : > { %5188 = vrcp.f32 %v3458_v6 }
 0x77f   : > { %5190 = vrcp.f32 %v3464_v7 }
 0x783   : > { %v5185_v8 = vpop.eup %5184 }
 0x784   : > { %v5187_v10 = vpop.eup %5186  ;;  %v3471_v14 = vadd.f32 1.0, %v5185_v8 }
 0x786   : > { %5192 = vrcp.f32 %v3471_v14 }
 0x788   : > { %v5189_v9 = vpop.eup %5188 }
 0x789   : > { %v5191_v12 = vpop.eup %5190  ;;  %v3475_v13 = vmul.f32 %v5189_v9, %v5187_v10 }
 0x78a   : > { %v3474_v15 = vmul.f32 %v5191_v12, %v3163_v11 }
 0x78c   : > { %v3476_v16 = vadd.f32 %v3475_v13, %v3474_v15 }
 0x78e   : > { %5194 = vtanh.f32 %v3476_v16  ;;  %3479 = vst.msk [vmem:[#allocation10] sm:$0xff] %vm361_vm1, %v3476_v16 }
 0x790   : > { %v5193_v17 = vpop.eup %5192 }
 0x795   : > { %v3482_v51 = vld [vmem:[#allocation10] sm:$0xff] }
 0x798   : > { %v5195_v18 = vpop.eup %5194 }
 0x799   : > { %v3478_v19 = vmul.f32 %v5195_v18, %v5193_v17 }
 0x79b   : > { %3480 = vst.msk [vmem:[#allocation9] sm:$0xff] %vm361_vm1, %v3478_v19 }
 0x7a2   : > { %v3481_v20 = vld [vmem:[#allocation9] sm:$0xff] }
 0x7a3   : > { %4748 = vmatmul.mubr.msk.f32.vlgmr.msra.gmra.mrb[44].mxu0 %vm361_vm1, %v3481_v20  ;;  %4759 = vmatmul.mubr.msk.f32.vlgmr.msra.gmra.mrb[44].mxu1 %vm361_vm1, %v3481_v20 }
 0x7a4   : > { %5040 = vmatpush3.bf16.msra.mxu0 %v5773_v58  ;;  %5046 = vmatpush3.bf16.msra.mxu1 %v5775_v59  ;;  %v3483_v58 = vld [vmem:[#allocation2 + $0x18] sm:$0xff] }
 0x7a5   : > { %5041 = vmatprep.subr.bf16.mxu0 %v5260_v38  ;;  %5047 = vmatprep.subr.bf16.mxu1 %v5260_v38 }
 0x7a6   : > { %4769 = vmatprep.mubr.msk.f32.mxu0 %vm5261_vm2, %v5262_v49  ;;  %4780 = vmatprep.mubr.msk.f32.mxu1 %vm5261_vm2, %v5262_v49 }
 0x7a8   : > { %5043 = vmatpush3.bf16.msra.mxu0 %v5787_v63  ;;  %5049 = vmatpush3.bf16.msra.mxu1 %v5789_v0  ;;  %v3702_v63 = vld [vmem:[#allocation5 + $0x18] sm:$0xff] }
 0x7a9   : > { %5050 = vmatprep.subr.bf16.mxu0 (!%p4084_p4), %v5263_v61 }
 0x7ab   : > { %4770 = vmatmul.mubr.msk.f32.vlgmr.msra.gmra.mrb[46].mxu0 %vm361_vm1, %v3481_v20  ;;  %4781 = vmatmul.mubr.msk.f32.vlgmr.msra.gmra.mrb[46].mxu1 %vm361_vm1, %v3481_v20 }
 0x7ac   : > { %4791 = vmatprep.mubr.msk.f32.mxu0 (!%p4084_p4), %vm5264_vm3, %v5265_v37  ;;  %5052 = vmatpush3.bf16.msra.mxu0 (!%p4084_p4), %v5051_v53 }
 0x7ad   : > { %5053 = vmatprep.subr.bf16.mxu0 (!%p4084_p4), %v5263_v61 }
 0x7b0   : > { %5055 = vmatpush3.bf16.msra.mxu0 (!%p4084_p4), %v5054_v1 }
 0x876   : > { %v3553_v59 = vpop.f32.mrb[44].mxu0  ;;  %v3625_v22 = vpop.f32.mrb[44].mxu1 }
 0x877   : > { %v3557_v23 = vadd.f32 %v3553_v59, %v3483_v58  ;;  %v3629_v38 = vadd.f32 %v3625_v22, %v3558_v21  ;;  %v4749_v24 = vpop.f32.mrb[45].mxu0  ;;  %v4760_v25 = vpop.f32.mrb[45].mxu1 }
 0x879   : > { %v4081_v26 = vmul.f32 -1.442695, %v3557_v23  ;;  %v4082_v27 = vmul.f32 -1.442695, %v3629_v38 }
 0x87b   : > { %5196 = vpow2.f32 %v4081_v26 }
 0x87c   : > { %5198 = vpow2.f32 %v4082_v27 }
 0x87e   : > { %v3697_v49 = vpop.f32.mrb[46].mxu0  ;;  %v3769_v28 = vpop.f32.mrb[46].mxu1 }
 0x87f   : > { %v3773_v0 = vadd.f32 %v3769_v28, %v3702_v63  ;;  %v4771_v29 = vpop.f32.mrb[47].mxu0  ;;  %v4782_v30 = vpop.f32.mrb[47].mxu1  ;;  %v3701_v50 = vadd.f32 %v3697_v49, %v3630_v31 }
 0x881   : > { %v4083_v48 = vmul.f32 -1.442695, %v3773_v0 }
 0x883   : > { %5200 = vpow2.f32 %v4083_v48 }
 0x884   : > { %5202 = vtanh.f32 %v3701_v50 }
 0x885   : > { %v5197_v32 = vpop.eup %5196 }
 0x886   : > { %v5199_v33 = vpop.eup %5198  ;;  %v3777_v36 = vadd.f32 1.0, %v5197_v32 }
 0x887   : > { %v3783_v39 = vadd.f32 1.0, %v5199_v33 }
 0x888   : > { %5204 = vrcp.f32 %v3777_v36 }
 0x889   : > { %5206 = vrcp.f32 %v3783_v39 }
 0x88d   : > { %v5201_v40 = vpop.eup %5200 }
 0x88e   : > { %v5203_v43 = vpop.eup %5202  ;;  %v3790_v45 = vadd.f32 1.0, %v5201_v40 }
 0x890   : > { %5208 = vrcp.f32 %v3790_v45 }
 0x892   : > { %v5205_v46 = vpop.eup %5204 }
 0x893   : > { %v5207_v47 = vpop.eup %5206  ;;  %v3794_v44 = vmul.f32 %v5205_v46, %v5203_v43 }
 0x894   : > { %v3793_v52 = vmul.f32 %v5207_v47, %v3482_v51 }
 0x896   : > { %v3795_v54 = vadd.f32 %v3794_v44, %v3793_v52 }
 0x898   : > { %5210 = vtanh.f32 %v3795_v54  ;;  %3798 = vst.msk [vmem:[#allocation10] sm:$0xff] %vm361_vm1, %v3795_v54 }
 0x89a   : > { %v5209_v34 = vpop.eup %5208 }
 0x89f   : > { %3803 = sbr.rel (%p4084_p4) target bundleno = 2462 (0x99e), region = 68 }
 0x8a2   : > { %v5211_v35 = vpop.eup %5210 }
 0x8a3   : > { %v3797_v57 = vmul.f32 %v5211_v35, %v5209_v34 }
 0x8a5   : > { %3799 = vst.msk [vmem:[#allocation9] sm:$0xff] %vm361_vm1, %v3797_v57 }
 0x8ac   : > { %v3804_v41 = vld [vmem:[#allocation9] sm:$0xff] }
 0x8ad   : > { %4792 = vmatmul.mubr.msk.f32.vlgmr.msra.gmra.mrb[0].mxu0 %vm361_vm1, %v3804_v41 }
 0x980   : > { %v3885_v42 = vpop.f32.mrb[0].mxu0 }
 0x981   : > { %v3886_v3 = vadd.f32 %v4085_v2, %v3885_v42  ;;  %v4793_v4 = vpop.f32.mrb[1].mxu0 }
 0x983   : > { %v4087_v5 = vmul.f32 -1.442695, %v3886_v3 }
 0x985   : > { %5212 = vpow2.f32 %v4087_v5 }
 0x98f   : > { %v5213_v6 = vpop.eup %5212 }
 0x990   : > { %v3892_v7 = vadd.f32 1.0, %v5213_v6 }
 0x992   : > { %5214 = vrcp.f32 %v3892_v7 }
 0x99c   : > { %v5215_v8 = vpop.eup %5214 }
 0x99d   : > { %3896 = vst.msk [vmem:[%s5944_s9] sm:$0xff] %vm3895_vm4, %v5215_v8 }
 0x99e PF: > { %s22_s11 = sadd.s32 1, %s5254_s11  }
 0x99f   : > { %p19_p6 = scmp.ge.s32.totalorder %s22_s11, 4  }
 0x9a1   :  { %21 = sbr.rel (!%p19_p6) target bundleno = 4 (0x4), region = 128 }
 0x9a8   :  { %3908 = vsyncpa [#allocation13], 1 }
 0x9a9   :  { %3910 = vsyncpa [#allocation13 + $0x1], 1 }

</bundles_post_ra>
